<compile_context>
chip_gen: v5e
topology: v5e:2x2
jax: 0.10.0
libtpu: 0.0.40
codegen_flags: <defaults>
</compile_context>

<pallas_src>
import functools
import math

import jax
import jax.numpy as jnp
import numpy as np
from jax.experimental import pallas as pl
from jax.experimental.pallas import tpu as pltpu

NEG_INF = -1e9  # finite large-negative (safe with f32 score math)

# order of the per-layer [1,H] vectors inside the packed "vecs" slab
VEC_BO, VEC_G1, VEC_BN1, VEC_BF2, VEC_G2, VEC_BN2 = range(6)


def _layer_norm(x, g, b, eps=1e-5):
    mu = jnp.mean(x, axis=-1, keepdims=True)
    var = jnp.mean((x - mu) ** 2, axis=-1, keepdims=True)
    return (x - mu) * jax.lax.rsqrt(var + eps) * g + b


# ------------------------------ fused kernel ------------------------------- #

def fused_encoder_kernel(num_heads, bb, seq, hidden,
                         x_ref, mask_ref, bias_ref,
                         wqkv_ref, bqkv_ref, wo_ref,
                         w1_ref, bf1_ref, w2_ref, vec_ref,
                         o_ref, x_scr):
    """Grid = (batch_block, layer). One full encoder layer per invocation."""
    layer = pl.program_id(1)
    nlayers = pl.num_programs(1)
    nh = num_heads
    dh = hidden // nh
    m = bb * seq
    scale = 1.0 / math.sqrt(dh)

    # Load the input activations into the resident VMEM scratch on layer 0.
    @pl.when(layer == 0)
    def _():
        x_scr[...] = x_ref[...]

    x = x_scr[...]                       # [M, H] f32 residual stream
    xb = x.astype(jnp.bfloat16)

    bo = vec_ref[0, VEC_BO]
    g1, bn1 = vec_ref[0, VEC_G1], vec_ref[0, VEC_BN1]
    bf2 = vec_ref[0, VEC_BF2]
    g2, bn2 = vec_ref[0, VEC_G2], vec_ref[0, VEC_BN2]

    # --- QKV projections: head-major weights -> only leading-dim indexing,
    #     each head is a full-width [M,H]@[H,dh] MXU matmul; no lane slices.
    def proj(idx, mult=None):
        cols = [jnp.dot(xb, wqkv_ref[0, idx, h],
                        preferred_element_type=jnp.float32) + bqkv_ref[0, idx, h]
                for h in range(nh)]
        r = jnp.stack(cols, axis=0)      # [nh, M, dh]  (leading-dim stack only)
        if mult is not None:
            r = r * mult
        # [nh, BB*S, dh] -> [nh*BB, S, dh]  (major-axis reshape only)
        return r.reshape(nh * bb, seq, dh)

    qh = proj(0, scale)                  # scale folded into q once
    kh = proj(1)
    vh = proj(2)

    # --- attention core: one head-batched contraction over all (head, row).
    s_att = jnp.einsum("bqd,bkd->bqk",
                       qh.astype(jnp.bfloat16), kh.astype(jnp.bfloat16),
                       preferred_element_type=jnp.float32)   # [nh*BB, S, S]
    # graph attn bias + key-padding mask (folded together on the host)
    s_att = s_att + bias_ref[...].reshape(nh * bb, seq, seq)
    s_att = s_att - jnp.max(s_att, axis=-1, keepdims=True)
    p = jnp.exp(s_att)
    p = p * pl.reciprocal(jnp.sum(p, axis=-1, keepdims=True), approx=True)
    pv = jnp.einsum("bqk,bkd->bqd",
                    p.astype(jnp.bfloat16), vh.astype(jnp.bfloat16),
                    preferred_element_type=jnp.float32)       # [nh*BB, S, dh]

    # --- output projection: fold head outputs directly into wo (no concat).
    attn = jnp.zeros((m, hidden), jnp.float32)
    for h in range(nh):
        blk = pv[h * bb:(h + 1) * bb].reshape(m, dh)
        attn = attn + jnp.dot(blk.astype(jnp.bfloat16), wo_ref[0, h],
                              preferred_element_type=jnp.float32)
    attn = attn + bo

    h1 = _layer_norm(x + attn, g1, bn1)

    # --- FFN on the flattened [M, H] slab (M = BB*S rows into the MXU).
    ff = jnp.dot(h1.astype(jnp.bfloat16), w1_ref[0],
                 preferred_element_type=jnp.float32) + bf1_ref[0]
    ff = jnp.maximum(ff, 0.0)
    ff = jnp.dot(ff.astype(jnp.bfloat16), w2_ref[0],
                 preferred_element_type=jnp.float32) + bf2
    h2 = _layer_norm(h1 + ff, g2, bn2)

    x_scr[...] = h2

    # --- masked sum over the sequence axis, emitted on the last layer only.
    @pl.when(layer == nlayers - 1)
    def _():
        xm = h2.reshape(bb, seq, hidden) * mask_ref[...][:, :, None]
        o_ref[...] = jnp.sum(xm, axis=1).astype(o_ref.dtype)


# --------------------------- host-side plumbing ---------------------------- #

def _pack_layer_params(layer_params, num_heads):
    """Stack per-layer params along a leading L axis; pack into few slabs."""
    L = len(layer_params)
    H = layer_params[0]["wq"].shape[0]
    nh = num_heads
    dh = H // nh
    F = layer_params[0]["w1"].shape[1]

    def stk(name):
        return jnp.stack([p[name] for p in layer_params], axis=0)

    def head_w(name):   # [L,H,H] -> [L,nh,H,dh]  (output columns grouped by head)
        return stk(name).reshape(L, H, nh, dh).transpose(0, 2, 1, 3)

    def head_b(name):   # [L,1,H] -> [L,nh,1,dh]
        return stk(name).reshape(L, 1, nh, dh).transpose(0, 2, 1, 3)

    wqkv = jnp.stack([head_w("wq"), head_w("wk"), head_w("wv")], axis=1)
    bqkv = jnp.stack([head_b("bq"), head_b("bk"), head_b("bv")], axis=1)

    vec_names = ("bo", "g1", "bn1", "bf2", "g2", "bn2")
    vecs = jnp.stack([stk(n).reshape(L, 1, H).astype(jnp.float32)
                      for n in vec_names], axis=1)            # [L, 6, 1, H]

    return dict(
        wqkv=wqkv,                                            # [L, 3, nh, H, dh] bf16
        bqkv=bqkv.astype(jnp.float32),                        # [L, 3, nh, 1, dh]
        wo=stk("wo").reshape(L, nh, dh, H),                   # [L, nh, dh, H]  bf16
        w1=stk("w1"),                                         # [L, H, F]       bf16
        bf1=stk("bf1").reshape(L, 1, F).astype(jnp.float32),  # [L, 1, F]
        w2=stk("w2"),                                         # [L, F, H]       bf16
        vecs=vecs,                                            # [L, 6, 1, H]
    )


def graph_encoder_forward(node_feat, mask, attn_bias, layer_params, num_heads,
                          batch_block=None):
    """Fused Pallas forward. node_feat [B,S,H], mask [B,S], attn_bias [B,nh,S,S]."""
    B, S, H = node_feat.shape
    L = len(layer_params)
    nh = num_heads
    assert H % nh == 0
    dh = H // nh
    F = layer_params[0]["w1"].shape[1]
    BB = B if batch_block is None else batch_block
    assert B % BB == 0 and (BB * S) % 8 == 0
    M = BB * S
    nb = B // BB

    packed = _pack_layer_params(layer_params, nh)

    # Fold the key-padding mask into the additive per-head bias (host side),
    # and arrange it head-major [nh, B, S, S] to match the kernel batch order.
    maskf = mask.astype(jnp.float32)
    add_mask = jnp.where(maskf[:, None, None, :] > 0.5, 0.0, NEG_INF)
    bias_all = (attn_bias.astype(jnp.float32) + add_mask).transpose(1, 0, 2, 3)

    x_flat = node_feat.astype(jnp.float32).reshape(B * S, H)

    kern = functools.partial(fused_encoder_kernel, nh, BB, S, H)

    def lmap(nd):
        return lambda b, l: (l,) + (0,) * (nd - 1)

    in_specs = [
        pl.BlockSpec((M, H), lambda b, l: (b, 0)),             # x (flattened)
        pl.BlockSpec((BB, S), lambda b, l: (b, 0)),            # mask
        pl.BlockSpec((nh, BB, S, S), lambda b, l: (0, b, 0, 0)),  # bias (head-major)
        pl.BlockSpec((1, 3, nh, H, dh), lmap(5)),              # wqkv
        pl.BlockSpec((1, 3, nh, 1, dh), lmap(5)),              # bqkv
        pl.BlockSpec((1, nh, dh, H), lmap(4)),                 # wo
        pl.BlockSpec((1, H, F), lmap(3)),                      # w1
        pl.BlockSpec((1, 1, F), lmap(3)),                      # bf1
        pl.BlockSpec((1, F, H), lmap(3)),                      # w2
        pl.BlockSpec((1, 6, 1, H), lmap(4)),                   # vecs
    ]

    # Advisory cost hint for XLA's scheduler.
    flops = int(2 * B * S * L * (4 * H * H + 2 * H * F + 2 * S * H))
    transcendentals = int(B * nh * S * S * L)
    bytes_accessed = int(
        4 * (2 * B * S * H + nh * B * S * S + B * H)
        + 2 * L * (3 * H * H + H * H + 2 * H * F) + 4 * L * 8 * H)

    return pl.pallas_call(
        kern,
        out_shape=jax.ShapeDtypeStruct((B, H), jnp.float32),
        grid=(nb, L),
        in_specs=in_specs,
        out_specs=pl.BlockSpec((BB, H), lambda b, l: (b, 0)),
        scratch_shapes=[pltpu.VMEM((M, H), jnp.float32)],
        cost_estimate=pl.CostEstimate(flops=flops,
                                      transcendentals=transcendentals,
                                      bytes_accessed=bytes_accessed),
        compiler_params=pltpu.CompilerParams(
            # batch blocks independent -> parallel (megacore);
            # layer axis carries the resident activation -> arbitrary.
            dimension_semantics=("parallel", "arbitrary"),
            vmem_limit_bytes=32 * 1024 * 1024),
    )(x_flat, maskf, bias_all,
      packed["wqkv"], packed["bqkv"], packed["wo"],
      packed["w1"], packed["bf1"], packed["w2"], packed["vecs"])


# ----------------------------- parameter init ------------------------------ #

def init_params(key, hidden, layers_n, ff_mult=4):
    F = hidden * ff_mult
    layers = []
    for _ in range(layers_n):
        key, *ks = jax.random.split(key, 14)

        def w(k, shape, fan_in):
            return (jax.random.normal(k, shape, jnp.float32)
                    / math.sqrt(fan_in)).astype(jnp.bfloat16)

        def b(k, n):
            return 0.1 * jax.random.normal(k, (1, n), jnp.float32)

        layers.append(dict(
            wq=w(ks[0], (hidden, hidden), hidden), bq=b(ks[1], hidden),
            wk=w(ks[2], (hidden, hidden), hidden), bk=b(ks[3], hidden),
            wv=w(ks[4], (hidden, hidden), hidden), bv=b(ks[5], hidden),
            wo=w(ks[6], (hidden, hidden), hidden), bo=b(ks[7], hidden),
            g1=jnp.ones((1, hidden), jnp.float32),
            bn1=jnp.zeros((1, hidden), jnp.float32),
            w1=w(ks[8], (hidden, F), hidden), bf1=b(ks[9], F),
            w2=w(ks[10], (F, hidden), F), bf2=b(ks[11], hidden),
            g2=jnp.ones((1, hidden), jnp.float32),
            bn2=jnp.zeros((1, hidden), jnp.float32),
        ))
    return layers


# ---------------------------- pure-JAX reference ---------------------------- #

def ref_forward(node_feat, mask, attn_bias, layer_params, num_heads):
    B, S, H = node_feat.shape
    nh = num_heads
    dh = H // nh
    scale = 1.0 / math.sqrt(dh)
    maskf = mask.astype(jnp.float32)
    bias = attn_bias.astype(jnp.float32) + jnp.where(
        maskf[:, None, None, :] > 0.5, 0.0, NEG_INF)          # [B,nh,S,S]
    x = node_feat.astype(jnp.float32)
    for p in layer_params:
        xb = x.astype(jnp.bfloat16)

        def proj(w, b):
            return jnp.einsum("bsh,hk->bsk", xb, w,
                              preferred_element_type=jnp.float32) + b

        q = proj(p["wq"], p["bq"]) * scale
        k = proj(p["wk"], p["bk"])
        v = proj(p["wv"], p["bv"])
        qh = q.reshape(B, S, nh, dh).astype(jnp.bfloat16)
        kh = k.reshape(B, S, nh, dh).astype(jnp.bfloat16)
        vh = v.reshape(B, S, nh, dh).astype(jnp.bfloat16)
        s = jnp.einsum("bqhd,bkhd->bhqk", qh, kh,
                       preferred_element_type=jnp.float32) + bias
        s = s - jnp.max(s, axis=-1, keepdims=True)
        pa = jnp.exp(s)
        pa = pa / jnp.sum(pa, axis=-1, keepdims=True)
        av = jnp.einsum("bhqk,bkhd->bqhd", pa.astype(jnp.bfloat16), vh,
                        preferred_element_type=jnp.float32).reshape(B, S, H)
        attn = jnp.einsum("bsh,hk->bsk", av.astype(jnp.bfloat16), p["wo"],
                          preferred_element_type=jnp.float32) + p["bo"]
        x = _layer_norm(x + attn, p["g1"], p["bn1"])
        ff = jnp.einsum("bsh,hf->bsf", x.astype(jnp.bfloat16), p["w1"],
                        preferred_element_type=jnp.float32) + p["bf1"]
        ff = jnp.maximum(ff, 0.0)
        ff = jnp.einsum("bsf,fh->bsh", ff.astype(jnp.bfloat16), p["w2"],
                        preferred_element_type=jnp.float32) + p["bf2"]
        x = _layer_norm(x + ff, p["g2"], p["bn2"])
    return jnp.sum(x * maskf[..., None], axis=1)


# ----------------------------------- main ----------------------------------- #

if __name__ == "__main__":
    B, S, H = 2, 8, 32
    NUM_HEADS, LAYERS_N = 4, 2

    key = jax.random.PRNGKey(0)
    k_in, k_bias, k_par = jax.random.split(key, 3)
    node_feat = jax.random.normal(k_in, (B, S, H), jnp.float32)
    # validity mask (input_graph['mask']); rows must have >=1 valid position
    lengths = jnp.array([5, 8], dtype=jnp.int32)
    mask = (jnp.arange(S)[None, :] < lengths[:, None]).astype(jnp.float32)
    # precomputed per-head graph attention bias (GraphAttnBias output)
    attn_bias = 0.1 * jax.random.normal(k_bias, (B, NUM_HEADS, S, S), jnp.float32)

    layer_params = init_params(k_par, H, LAYERS_N)

    out = graph_encoder_forward(node_feat, mask, attn_bias, layer_params,
                                NUM_HEADS)
    out = jax.block_until_ready(out)

    ref = jax.block_until_ready(
        ref_forward(node_feat, mask, attn_bias, layer_params, NUM_HEADS))

    assert out.shape == (B, H)
    assert np.all(np.isfinite(np.asarray(out)))
    np.testing.assert_allclose(np.asarray(out), np.asarray(ref),
                               atol=2e-2, rtol=2e-2)
    print("KERNEL_OK")
</pallas_src>

<mosaic_0001>
module attributes {stable_mosaic.version = 11 : i64} {
  func.func @fused_encoder_kernel(%arg0: i32, %arg1: i32, %arg2: memref<16x32xf32, #tpu.memory_space<vmem>>, %arg3: memref<2x8xf32, #tpu.memory_space<vmem>>, %arg4: memref<4x2x8x8xf32, #tpu.memory_space<vmem>>, %arg5: memref<1x3x4x32x8xbf16, #tpu.memory_space<vmem>>, %arg6: memref<1x3x4x1x8xf32, #tpu.memory_space<vmem>>, %arg7: memref<1x4x8x32xbf16, #tpu.memory_space<vmem>>, %arg8: memref<1x32x128xbf16, #tpu.memory_space<vmem>>, %arg9: memref<1x1x128xf32, #tpu.memory_space<vmem>>, %arg10: memref<1x128x32xbf16, #tpu.memory_space<vmem>>, %arg11: memref<1x6x1x32xf32, #tpu.memory_space<vmem>>, %arg12: memref<2x32xf32, #tpu.memory_space<vmem>>, %arg13: memref<16x32xf32, #tpu.memory_space<vmem>>) attributes {dimension_semantics = [#tpu.dimension_semantics<parallel>, #tpu.dimension_semantics<arbitrary>], iteration_bounds = array<i64: 1, 2>, scalar_prefetch = 0 : i64, scratch_operands = 1 : i64, tpu.core_type = #tpu.core_type<tc>, window_params = [{transform_indices = @transform_0, window_bounds = array<i64: 16, 32>}, {transform_indices = @transform_1, window_bounds = array<i64: 2, 8>}, {transform_indices = @transform_2, window_bounds = array<i64: 4, 2, 8, 8>}, {transform_indices = @transform_3, window_bounds = array<i64: 1, 3, 4, 32, 8>}, {transform_indices = @transform_4, window_bounds = array<i64: 1, 3, 4, 1, 8>}, {transform_indices = @transform_5, window_bounds = array<i64: 1, 4, 8, 32>}, {transform_indices = @transform_6, window_bounds = array<i64: 1, 32, 128>}, {transform_indices = @transform_7, window_bounds = array<i64: 1, 1, 128>}, {transform_indices = @transform_8, window_bounds = array<i64: 1, 128, 32>}, {transform_indices = @transform_9, window_bounds = array<i64: 1, 6, 1, 32>}, {transform_indices = @transform_10, window_bounds = array<i64: 2, 32>}]} {
    %c0_i32 = arith.constant 0 : i32
    %0 = arith.cmpi eq, %arg1, %c0_i32 : i32
    %1 = arith.extui %0 : i1 to i32
    %c0_i32_0 = arith.constant 0 : i32
    %2 = arith.cmpi ne, %1, %c0_i32_0 : i32
    scf.if %2 {
      %c0_207 = arith.constant 0 : index
      %c0_208 = arith.constant 0 : index
      %237 = vector.load %arg2[%c0_207, %c0_208] : memref<16x32xf32, #tpu.memory_space<vmem>>, vector<16x32xf32>
      %c0_209 = arith.constant 0 : index
      %c0_210 = arith.constant 0 : index
      %238 = vector.load %arg13[%c0_209, %c0_210] : memref<16x32xf32, #tpu.memory_space<vmem>>, vector<16x32xf32>
      tpu.vector_store %arg13[%c0_209, %c0_210], %237 {strides = array<i32>} : memref<16x32xf32, #tpu.memory_space<vmem>>, vector<16x32xf32>,
    } else {
    }
    %c0 = arith.constant 0 : index
    %c0_1 = arith.constant 0 : index
    %3 = vector.load %arg13[%c0, %c0_1] : memref<16x32xf32, #tpu.memory_space<vmem>>, vector<16x32xf32>
    %4 = arith.truncf %3 : vector<16x32xf32> to vector<16x32xbf16>
    %c0_2 = arith.constant 0 : index
    %c0_3 = arith.constant 0 : index
    %c0_4 = arith.constant 0 : index
    %c0_5 = arith.constant 0 : index
    %5 = vector.load %arg11[%c0_2, %c0_3, %c0_4, %c0_5] : memref<1x6x1x32xf32, #tpu.memory_space<vmem>>, vector<1x1x1x32xf32>
    %6 = vector.shape_cast %5 : vector<1x1x1x32xf32> to vector<1x32xf32>
    %c0_6 = arith.constant 0 : index
    %c1 = arith.constant 1 : index
    %c0_7 = arith.constant 0 : index
    %c0_8 = arith.constant 0 : index
    %7 = vector.load %arg11[%c0_6, %c1, %c0_7, %c0_8] : memref<1x6x1x32xf32, #tpu.memory_space<vmem>>, vector<1x1x1x32xf32>
    %8 = vector.shape_cast %7 : vector<1x1x1x32xf32> to vector<1x32xf32>
    %c0_9 = arith.constant 0 : index
    %c2 = arith.constant 2 : index
    %c0_10 = arith.constant 0 : index
    %c0_11 = arith.constant 0 : index
    %9 = vector.load %arg11[%c0_9, %c2, %c0_10, %c0_11] : memref<1x6x1x32xf32, #tpu.memory_space<vmem>>, vector<1x1x1x32xf32>
    %10 = vector.shape_cast %9 : vector<1x1x1x32xf32> to vector<1x32xf32>
    %c0_12 = arith.constant 0 : index
    %c3 = arith.constant 3 : index
    %c0_13 = arith.constant 0 : index
    %c0_14 = arith.constant 0 : index
    %11 = vector.load %arg11[%c0_12, %c3, %c0_13, %c0_14] : memref<1x6x1x32xf32, #tpu.memory_space<vmem>>, vector<1x1x1x32xf32>
    %12 = vector.shape_cast %11 : vector<1x1x1x32xf32> to vector<1x32xf32>
    %c0_15 = arith.constant 0 : index
    %c4 = arith.constant 4 : index
    %c0_16 = arith.constant 0 : index
    %c0_17 = arith.constant 0 : index
    %13 = vector.load %arg11[%c0_15, %c4, %c0_16, %c0_17] : memref<1x6x1x32xf32, #tpu.memory_space<vmem>>, vector<1x1x1x32xf32>
    %14 = vector.shape_cast %13 : vector<1x1x1x32xf32> to vector<1x32xf32>
    %c0_18 = arith.constant 0 : index
    %c5 = arith.constant 5 : index
    %c0_19 = arith.constant 0 : index
    %c0_20 = arith.constant 0 : index
    %15 = vector.load %arg11[%c0_18, %c5, %c0_19, %c0_20] : memref<1x6x1x32xf32, #tpu.memory_space<vmem>>, vector<1x1x1x32xf32>
    %16 = vector.shape_cast %15 : vector<1x1x1x32xf32> to vector<1x32xf32>
    %c0_21 = arith.constant 0 : index
    %c0_22 = arith.constant 0 : index
    %c0_23 = arith.constant 0 : index
    %c0_24 = arith.constant 0 : index
    %c0_25 = arith.constant 0 : index
    %17 = vector.load %arg5[%c0_21, %c0_22, %c0_23, %c0_24, %c0_25] : memref<1x3x4x32x8xbf16, #tpu.memory_space<vmem>>, vector<1x1x1x32x8xbf16>
    %18 = vector.shape_cast %17 : vector<1x1x1x32x8xbf16> to vector<32x8xbf16>
    %cst = arith.constant dense<0.000000e+00> : vector<16x8xf32>
    %19 = tpu.matmul %4, %18, %cst {dimension_numbers = #tpu.dot_dimension_numbers<[1], [0], [0], [1], [0, 0, 1, 1], [], []>} : vector<16x32xbf16>, vector<32x8xbf16>, vector<16x8xf32> -> vector<16x8xf32>
    %c0_26 = arith.constant 0 : index
    %c0_27 = arith.constant 0 : index
    %c0_28 = arith.constant 0 : index
    %c0_29 = arith.constant 0 : index
    %c0_30 = arith.constant 0 : index
    %20 = vector.load %arg6[%c0_26, %c0_27, %c0_28, %c0_29, %c0_30] : memref<1x3x4x1x8xf32, #tpu.memory_space<vmem>>, vector<1x1x1x1x8xf32>
    %21 = vector.shape_cast %20 : vector<1x1x1x1x8xf32> to vector<1x8xf32>
    %22 = vector.broadcast %21 : vector<1x8xf32> to vector<16x8xf32>
    %23 = arith.addf %19, %22 : vector<16x8xf32>
    %c0_31 = arith.constant 0 : index
    %c0_32 = arith.constant 0 : index
    %c1_33 = arith.constant 1 : index
    %c0_34 = arith.constant 0 : index
    %c0_35 = arith.constant 0 : index
    %24 = vector.load %arg5[%c0_31, %c0_32, %c1_33, %c0_34, %c0_35] : memref<1x3x4x32x8xbf16, #tpu.memory_space<vmem>>, vector<1x1x1x32x8xbf16>
    %25 = vector.shape_cast %24 : vector<1x1x1x32x8xbf16> to vector<32x8xbf16>
    %cst_36 = arith.constant dense<0.000000e+00> : vector<16x8xf32>
    %26 = tpu.matmul %4, %25, %cst_36 {dimension_numbers = #tpu.dot_dimension_numbers<[1], [0], [0], [1], [0, 0, 1, 1], [], []>} : vector<16x32xbf16>, vector<32x8xbf16>, vector<16x8xf32> -> vector<16x8xf32>
    %c0_37 = arith.constant 0 : index
    %c0_38 = arith.constant 0 : index
    %c1_39 = arith.constant 1 : index
    %c0_40 = arith.constant 0 : index
    %c0_41 = arith.constant 0 : index
    %27 = vector.load %arg6[%c0_37, %c0_38, %c1_39, %c0_40, %c0_41] : memref<1x3x4x1x8xf32, #tpu.memory_space<vmem>>, vector<1x1x1x1x8xf32>
    %28 = vector.shape_cast %27 : vector<1x1x1x1x8xf32> to vector<1x8xf32>
    %29 = vector.broadcast %28 : vector<1x8xf32> to vector<16x8xf32>
    %30 = arith.addf %26, %29 : vector<16x8xf32>
    %c0_42 = arith.constant 0 : index
    %c0_43 = arith.constant 0 : index
    %c2_44 = arith.constant 2 : index
    %c0_45 = arith.constant 0 : index
    %c0_46 = arith.constant 0 : index
    %31 = vector.load %arg5[%c0_42, %c0_43, %c2_44, %c0_45, %c0_46] : memref<1x3x4x32x8xbf16, #tpu.memory_space<vmem>>, vector<1x1x1x32x8xbf16>
    %32 = vector.shape_cast %31 : vector<1x1x1x32x8xbf16> to vector<32x8xbf16>
    %cst_47 = arith.constant dense<0.000000e+00> : vector<16x8xf32>
    %33 = tpu.matmul %4, %32, %cst_47 {dimension_numbers = #tpu.dot_dimension_numbers<[1], [0], [0], [1], [0, 0, 1, 1], [], []>} : vector<16x32xbf16>, vector<32x8xbf16>, vector<16x8xf32> -> vector<16x8xf32>
    %c0_48 = arith.constant 0 : index
    %c0_49 = arith.constant 0 : index
    %c2_50 = arith.constant 2 : index
    %c0_51 = arith.constant 0 : index
    %c0_52 = arith.constant 0 : index
    %34 = vector.load %arg6[%c0_48, %c0_49, %c2_50, %c0_51, %c0_52] : memref<1x3x4x1x8xf32, #tpu.memory_space<vmem>>, vector<1x1x1x1x8xf32>
    %35 = vector.shape_cast %34 : vector<1x1x1x1x8xf32> to vector<1x8xf32>
    %36 = vector.broadcast %35 : vector<1x8xf32> to vector<16x8xf32>
    %37 = arith.addf %33, %36 : vector<16x8xf32>
    %c0_53 = arith.constant 0 : index
    %c0_54 = arith.constant 0 : index
    %c3_55 = arith.constant 3 : index
    %c0_56 = arith.constant 0 : index
    %c0_57 = arith.constant 0 : index
    %38 = vector.load %arg5[%c0_53, %c0_54, %c3_55, %c0_56, %c0_57] : memref<1x3x4x32x8xbf16, #tpu.memory_space<vmem>>, vector<1x1x1x32x8xbf16>
    %39 = vector.shape_cast %38 : vector<1x1x1x32x8xbf16> to vector<32x8xbf16>
    %cst_58 = arith.constant dense<0.000000e+00> : vector<16x8xf32>
    %40 = tpu.matmul %4, %39, %cst_58 {dimension_numbers = #tpu.dot_dimension_numbers<[1], [0], [0], [1], [0, 0, 1, 1], [], []>} : vector<16x32xbf16>, vector<32x8xbf16>, vector<16x8xf32> -> vector<16x8xf32>
    %c0_59 = arith.constant 0 : index
    %c0_60 = arith.constant 0 : index
    %c3_61 = arith.constant 3 : index
    %c0_62 = arith.constant 0 : index
    %c0_63 = arith.constant 0 : index
    %41 = vector.load %arg6[%c0_59, %c0_60, %c3_61, %c0_62, %c0_63] : memref<1x3x4x1x8xf32, #tpu.memory_space<vmem>>, vector<1x1x1x1x8xf32>
    %42 = vector.shape_cast %41 : vector<1x1x1x1x8xf32> to vector<1x8xf32>
    %43 = vector.broadcast %42 : vector<1x8xf32> to vector<16x8xf32>
    %44 = arith.addf %40, %43 : vector<16x8xf32>
    %45 = vector.shape_cast %23 : vector<16x8xf32> to vector<1x16x8xf32>
    %46 = vector.shape_cast %30 : vector<16x8xf32> to vector<1x16x8xf32>
    %47 = vector.shape_cast %37 : vector<16x8xf32> to vector<1x16x8xf32>
    %48 = vector.shape_cast %44 : vector<16x8xf32> to vector<1x16x8xf32>
    %49 = tpu.concatenate %45, %46, %47, %48 in 0 : vector<1x16x8xf32>, vector<1x16x8xf32>, vector<1x16x8xf32>, vector<1x16x8xf32> -> vector<4x16x8xf32>
    %cst_64 = arith.constant 0.353553385 : f32
    %50 = vector.broadcast %cst_64 : f32 to vector<4x16x8xf32>
    %51 = arith.mulf %49, %50 : vector<4x16x8xf32>
    %52 = vector.shape_cast %51 : vector<4x16x8xf32> to vector<8x8x8xf32>
    %c0_65 = arith.constant 0 : index
    %c1_66 = arith.constant 1 : index
    %c0_67 = arith.constant 0 : index
    %c0_68 = arith.constant 0 : index
    %c0_69 = arith.constant 0 : index
    %53 = vector.load %arg5[%c0_65, %c1_66, %c0_67, %c0_68, %c0_69] : memref<1x3x4x32x8xbf16, #tpu.memory_space<vmem>>, vector<1x1x1x32x8xbf16>
    %54 = vector.shape_cast %53 : vector<1x1x1x32x8xbf16> to vector<32x8xbf16>
    %cst_70 = arith.constant dense<0.000000e+00> : vector<16x8xf32>
    %55 = tpu.matmul %4, %54, %cst_70 {dimension_numbers = #tpu.dot_dimension_numbers<[1], [0], [0], [1], [0, 0, 1, 1], [], []>} : vector<16x32xbf16>, vector<32x8xbf16>, vector<16x8xf32> -> vector<16x8xf32>
    %c0_71 = arith.constant 0 : index
    %c1_72 = arith.constant 1 : index
    %c0_73 = arith.constant 0 : index
    %c0_74 = arith.constant 0 : index
    %c0_75 = arith.constant 0 : index
    %56 = vector.load %arg6[%c0_71, %c1_72, %c0_73, %c0_74, %c0_75] : memref<1x3x4x1x8xf32, #tpu.memory_space<vmem>>, vector<1x1x1x1x8xf32>
    %57 = vector.shape_cast %56 : vector<1x1x1x1x8xf32> to vector<1x8xf32>
    %58 = vector.broadcast %57 : vector<1x8xf32> to vector<16x8xf32>
    %59 = arith.addf %55, %58 : vector<16x8xf32>
    %c0_76 = arith.constant 0 : index
    %c1_77 = arith.constant 1 : index
    %c1_78 = arith.constant 1 : index
    %c0_79 = arith.constant 0 : index
    %c0_80 = arith.constant 0 : index
    %60 = vector.load %arg5[%c0_76, %c1_77, %c1_78, %c0_79, %c0_80] : memref<1x3x4x32x8xbf16, #tpu.memory_space<vmem>>, vector<1x1x1x32x8xbf16>
    %61 = vector.shape_cast %60 : vector<1x1x1x32x8xbf16> to vector<32x8xbf16>
    %cst_81 = arith.constant dense<0.000000e+00> : vector<16x8xf32>
    %62 = tpu.matmul %4, %61, %cst_81 {dimension_numbers = #tpu.dot_dimension_numbers<[1], [0], [0], [1], [0, 0, 1, 1], [], []>} : vector<16x32xbf16>, vector<32x8xbf16>, vector<16x8xf32> -> vector<16x8xf32>
    %c0_82 = arith.constant 0 : index
    %c1_83 = arith.constant 1 : index
    %c1_84 = arith.constant 1 : index
    %c0_85 = arith.constant 0 : index
    %c0_86 = arith.constant 0 : index
    %63 = vector.load %arg6[%c0_82, %c1_83, %c1_84, %c0_85, %c0_86] : memref<1x3x4x1x8xf32, #tpu.memory_space<vmem>>, vector<1x1x1x1x8xf32>
    %64 = vector.shape_cast %63 : vector<1x1x1x1x8xf32> to vector<1x8xf32>
    %65 = vector.broadcast %64 : vector<1x8xf32> to vector<16x8xf32>
    %66 = arith.addf %62, %65 : vector<16x8xf32>
    %c0_87 = arith.constant 0 : index
    %c1_88 = arith.constant 1 : index
    %c2_89 = arith.constant 2 : index
    %c0_90 = arith.constant 0 : index
    %c0_91 = arith.constant 0 : index
    %67 = vector.load %arg5[%c0_87, %c1_88, %c2_89, %c0_90, %c0_91] : memref<1x3x4x32x8xbf16, #tpu.memory_space<vmem>>, vector<1x1x1x32x8xbf16>
    %68 = vector.shape_cast %67 : vector<1x1x1x32x8xbf16> to vector<32x8xbf16>
    %cst_92 = arith.constant dense<0.000000e+00> : vector<16x8xf32>
    %69 = tpu.matmul %4, %68, %cst_92 {dimension_numbers = #tpu.dot_dimension_numbers<[1], [0], [0], [1], [0, 0, 1, 1], [], []>} : vector<16x32xbf16>, vector<32x8xbf16>, vector<16x8xf32> -> vector<16x8xf32>
    %c0_93 = arith.constant 0 : index
    %c1_94 = arith.constant 1 : index
    %c2_95 = arith.constant 2 : index
    %c0_96 = arith.constant 0 : index
    %c0_97 = arith.constant 0 : index
    %70 = vector.load %arg6[%c0_93, %c1_94, %c2_95, %c0_96, %c0_97] : memref<1x3x4x1x8xf32, #tpu.memory_space<vmem>>, vector<1x1x1x1x8xf32>
    %71 = vector.shape_cast %70 : vector<1x1x1x1x8xf32> to vector<1x8xf32>
    %72 = vector.broadcast %71 : vector<1x8xf32> to vector<16x8xf32>
    %73 = arith.addf %69, %72 : vector<16x8xf32>
    %c0_98 = arith.constant 0 : index
    %c1_99 = arith.constant 1 : index
    %c3_100 = arith.constant 3 : index
    %c0_101 = arith.constant 0 : index
    %c0_102 = arith.constant 0 : index
    %74 = vector.load %arg5[%c0_98, %c1_99, %c3_100, %c0_101, %c0_102] : memref<1x3x4x32x8xbf16, #tpu.memory_space<vmem>>, vector<1x1x1x32x8xbf16>
    %75 = vector.shape_cast %74 : vector<1x1x1x32x8xbf16> to vector<32x8xbf16>
    %cst_103 = arith.constant dense<0.000000e+00> : vector<16x8xf32>
    %76 = tpu.matmul %4, %75, %cst_103 {dimension_numbers = #tpu.dot_dimension_numbers<[1], [0], [0], [1], [0, 0, 1, 1], [], []>} : vector<16x32xbf16>, vector<32x8xbf16>, vector<16x8xf32> -> vector<16x8xf32>
    %c0_104 = arith.constant 0 : index
    %c1_105 = arith.constant 1 : index
    %c3_106 = arith.constant 3 : index
    %c0_107 = arith.constant 0 : index
    %c0_108 = arith.constant 0 : index
    %77 = vector.load %arg6[%c0_104, %c1_105, %c3_106, %c0_107, %c0_108] : memref<1x3x4x1x8xf32, #tpu.memory_space<vmem>>, vector<1x1x1x1x8xf32>
    %78 = vector.shape_cast %77 : vector<1x1x1x1x8xf32> to vector<1x8xf32>
    %79 = vector.broadcast %78 : vector<1x8xf32> to vector<16x8xf32>
    %80 = arith.addf %76, %79 : vector<16x8xf32>
    %81 = vector.shape_cast %59 : vector<16x8xf32> to vector<1x16x8xf32>
    %82 = vector.shape_cast %66 : vector<16x8xf32> to vector<1x16x8xf32>
    %83 = vector.shape_cast %73 : vector<16x8xf32> to vector<1x16x8xf32>
    %84 = vector.shape_cast %80 : vector<16x8xf32> to vector<1x16x8xf32>
    %85 = tpu.concatenate %81, %82, %83, %84 in 0 : vector<1x16x8xf32>, vector<1x16x8xf32>, vector<1x16x8xf32>, vector<1x16x8xf32> -> vector<4x16x8xf32>
    %86 = vector.shape_cast %85 : vector<4x16x8xf32> to vector<8x8x8xf32>
    %c0_109 = arith.constant 0 : index
    %c2_110 = arith.constant 2 : index
    %c0_111 = arith.constant 0 : index
    %c0_112 = arith.constant 0 : index
    %c0_113 = arith.constant 0 : index
    %87 = vector.load %arg5[%c0_109, %c2_110, %c0_111, %c0_112, %c0_113] : memref<1x3x4x32x8xbf16, #tpu.memory_space<vmem>>, vector<1x1x1x32x8xbf16>
    %88 = vector.shape_cast %87 : vector<1x1x1x32x8xbf16> to vector<32x8xbf16>
    %cst_114 = arith.constant dense<0.000000e+00> : vector<16x8xf32>
    %89 = tpu.matmul %4, %88, %cst_114 {dimension_numbers = #tpu.dot_dimension_numbers<[1], [0], [0], [1], [0, 0, 1, 1], [], []>} : vector<16x32xbf16>, vector<32x8xbf16>, vector<16x8xf32> -> vector<16x8xf32>
    %c0_115 = arith.constant 0 : index
    %c2_116 = arith.constant 2 : index
    %c0_117 = arith.constant 0 : index
    %c0_118 = arith.constant 0 : index
    %c0_119 = arith.constant 0 : index
    %90 = vector.load %arg6[%c0_115, %c2_116, %c0_117, %c0_118, %c0_119] : memref<1x3x4x1x8xf32, #tpu.memory_space<vmem>>, vector<1x1x1x1x8xf32>
    %91 = vector.shape_cast %90 : vector<1x1x1x1x8xf32> to vector<1x8xf32>
    %92 = vector.broadcast %91 : vector<1x8xf32> to vector<16x8xf32>
    %93 = arith.addf %89, %92 : vector<16x8xf32>
    %c0_120 = arith.constant 0 : index
    %c2_121 = arith.constant 2 : index
    %c1_122 = arith.constant 1 : index
    %c0_123 = arith.constant 0 : index
    %c0_124 = arith.constant 0 : index
    %94 = vector.load %arg5[%c0_120, %c2_121, %c1_122, %c0_123, %c0_124] : memref<1x3x4x32x8xbf16, #tpu.memory_space<vmem>>, vector<1x1x1x32x8xbf16>
    %95 = vector.shape_cast %94 : vector<1x1x1x32x8xbf16> to vector<32x8xbf16>
    %cst_125 = arith.constant dense<0.000000e+00> : vector<16x8xf32>
    %96 = tpu.matmul %4, %95, %cst_125 {dimension_numbers = #tpu.dot_dimension_numbers<[1], [0], [0], [1], [0, 0, 1, 1], [], []>} : vector<16x32xbf16>, vector<32x8xbf16>, vector<16x8xf32> -> vector<16x8xf32>
    %c0_126 = arith.constant 0 : index
    %c2_127 = arith.constant 2 : index
    %c1_128 = arith.constant 1 : index
    %c0_129 = arith.constant 0 : index
    %c0_130 = arith.constant 0 : index
    %97 = vector.load %arg6[%c0_126, %c2_127, %c1_128, %c0_129, %c0_130] : memref<1x3x4x1x8xf32, #tpu.memory_space<vmem>>, vector<1x1x1x1x8xf32>
    %98 = vector.shape_cast %97 : vector<1x1x1x1x8xf32> to vector<1x8xf32>
    %99 = vector.broadcast %98 : vector<1x8xf32> to vector<16x8xf32>
    %100 = arith.addf %96, %99 : vector<16x8xf32>
    %c0_131 = arith.constant 0 : index
    %c2_132 = arith.constant 2 : index
    %c2_133 = arith.constant 2 : index
    %c0_134 = arith.constant 0 : index
    %c0_135 = arith.constant 0 : index
    %101 = vector.load %arg5[%c0_131, %c2_132, %c2_133, %c0_134, %c0_135] : memref<1x3x4x32x8xbf16, #tpu.memory_space<vmem>>, vector<1x1x1x32x8xbf16>
    %102 = vector.shape_cast %101 : vector<1x1x1x32x8xbf16> to vector<32x8xbf16>
    %cst_136 = arith.constant dense<0.000000e+00> : vector<16x8xf32>
    %103 = tpu.matmul %4, %102, %cst_136 {dimension_numbers = #tpu.dot_dimension_numbers<[1], [0], [0], [1], [0, 0, 1, 1], [], []>} : vector<16x32xbf16>, vector<32x8xbf16>, vector<16x8xf32> -> vector<16x8xf32>
    %c0_137 = arith.constant 0 : index
    %c2_138 = arith.constant 2 : index
    %c2_139 = arith.constant 2 : index
    %c0_140 = arith.constant 0 : index
    %c0_141 = arith.constant 0 : index
    %104 = vector.load %arg6[%c0_137, %c2_138, %c2_139, %c0_140, %c0_141] : memref<1x3x4x1x8xf32, #tpu.memory_space<vmem>>, vector<1x1x1x1x8xf32>
    %105 = vector.shape_cast %104 : vector<1x1x1x1x8xf32> to vector<1x8xf32>
    %106 = vector.broadcast %105 : vector<1x8xf32> to vector<16x8xf32>
    %107 = arith.addf %103, %106 : vector<16x8xf32>
    %c0_142 = arith.constant 0 : index
    %c2_143 = arith.constant 2 : index
    %c3_144 = arith.constant 3 : index
    %c0_145 = arith.constant 0 : index
    %c0_146 = arith.constant 0 : index
    %108 = vector.load %arg5[%c0_142, %c2_143, %c3_144, %c0_145, %c0_146] : memref<1x3x4x32x8xbf16, #tpu.memory_space<vmem>>, vector<1x1x1x32x8xbf16>
    %109 = vector.shape_cast %108 : vector<1x1x1x32x8xbf16> to vector<32x8xbf16>
    %cst_147 = arith.constant dense<0.000000e+00> : vector<16x8xf32>
    %110 = tpu.matmul %4, %109, %cst_147 {dimension_numbers = #tpu.dot_dimension_numbers<[1], [0], [0], [1], [0, 0, 1, 1], [], []>} : vector<16x32xbf16>, vector<32x8xbf16>, vector<16x8xf32> -> vector<16x8xf32>
    %c0_148 = arith.constant 0 : index
    %c2_149 = arith.constant 2 : index
    %c3_150 = arith.constant 3 : index
    %c0_151 = arith.constant 0 : index
    %c0_152 = arith.constant 0 : index
    %111 = vector.load %arg6[%c0_148, %c2_149, %c3_150, %c0_151, %c0_152] : memref<1x3x4x1x8xf32, #tpu.memory_space<vmem>>, vector<1x1x1x1x8xf32>
    %112 = vector.shape_cast %111 : vector<1x1x1x1x8xf32> to vector<1x8xf32>
    %113 = vector.broadcast %112 : vector<1x8xf32> to vector<16x8xf32>
    %114 = arith.addf %110, %113 : vector<16x8xf32>
    %115 = vector.shape_cast %93 : vector<16x8xf32> to vector<1x16x8xf32>
    %116 = vector.shape_cast %100 : vector<16x8xf32> to vector<1x16x8xf32>
    %117 = vector.shape_cast %107 : vector<16x8xf32> to vector<1x16x8xf32>
    %118 = vector.shape_cast %114 : vector<16x8xf32> to vector<1x16x8xf32>
    %119 = tpu.concatenate %115, %116, %117, %118 in 0 : vector<1x16x8xf32>, vector<1x16x8xf32>, vector<1x16x8xf32>, vector<1x16x8xf32> -> vector<4x16x8xf32>
    %120 = vector.shape_cast %119 : vector<4x16x8xf32> to vector<8x8x8xf32>
    %121 = arith.truncf %52 : vector<8x8x8xf32> to vector<8x8x8xbf16>
    %122 = arith.truncf %86 : vector<8x8x8xf32> to vector<8x8x8xbf16>
    "tpu.trace_start"() <{level = 10 : i32, message = "bqd,bkd->bqk"}> : () -> ()
    %cst_153 = arith.constant dense<0.000000e+00> : vector<8x8x8xf32>
    %123 = tpu.matmul %121, %122, %cst_153 {dimension_numbers = #tpu.dot_dimension_numbers<[2], [2], [1], [1], [0, 0, 0, 1, 1, 1], [0], [0]>} : vector<8x8x8xbf16>, vector<8x8x8xbf16>, vector<8x8x8xf32> -> vector<8x8x8xf32>
    "tpu.trace_stop"() : () -> ()
    %c0_154 = arith.constant 0 : index
    %c0_155 = arith.constant 0 : index
    %c0_156 = arith.constant 0 : index
    %c0_157 = arith.constant 0 : index
    %124 = vector.load %arg4[%c0_154, %c0_155, %c0_156, %c0_157] : memref<4x2x8x8xf32, #tpu.memory_space<vmem>>, vector<4x2x8x8xf32>
    %125 = vector.shape_cast %124 : vector<4x2x8x8xf32> to vector<8x8x8xf32>
    %126 = arith.addf %123, %125 : vector<8x8x8xf32>
    %cst_158 = arith.constant dense<0xFF800000> : vector<8x8xf32>
    %127 = vector.multi_reduction <maximumf>, %126, %cst_158 [2] : vector<8x8x8xf32> to vector<8x8xf32>
    %128 = vector.shape_cast %127 : vector<8x8xf32> to vector<8x8x1xf32>
    %129 = vector.broadcast %128 : vector<8x8x1xf32> to vector<8x8x8xf32>
    %130 = arith.subf %126, %129 : vector<8x8x8xf32>
    %131 = math.exp %130 : vector<8x8x8xf32>
    %cst_159 = arith.constant dense<0.000000e+00> : vector<8x8xf32>
    %132 = vector.multi_reduction <add>, %131, %cst_159 [2] : vector<8x8x8xf32> to vector<8x8xf32>
    %133 = vector.shape_cast %132 : vector<8x8xf32> to vector<8x8x1xf32>
    %134 = tpu.reciprocal %133 {approx = true} : vector<8x8x1xf32> -> vector<8x8x1xf32>
    %135 = vector.broadcast %134 : vector<8x8x1xf32> to vector<8x8x8xf32>
    %136 = arith.mulf %131, %135 : vector<8x8x8xf32>
    %137 = arith.truncf %136 : vector<8x8x8xf32> to vector<8x8x8xbf16>
    %138 = arith.truncf %120 : vector<8x8x8xf32> to vector<8x8x8xbf16>
    "tpu.trace_start"() <{level = 10 : i32, message = "bqk,bkd->bqd"}> : () -> ()
    %cst_160 = arith.constant dense<0.000000e+00> : vector<8x8x8xf32>
    %139 = tpu.matmul %137, %138, %cst_160 {dimension_numbers = #tpu.dot_dimension_numbers<[2], [1], [1], [2], [0, 0, 0, 1, 1, 2], [0], [0]>} : vector<8x8x8xbf16>, vector<8x8x8xbf16>, vector<8x8x8xf32> -> vector<8x8x8xf32>
    %cst_161 = arith.constant 0.000000e+00 : f32
    "tpu.trace_stop"() : () -> ()
    %140 = vector.broadcast %cst_161 : f32 to vector<16x32xf32>
    %141 = vector.extract_strided_slice %139 {offsets = [0, 0, 0], sizes = [2, 8, 8], strides = [1, 1, 1]} : vector<8x8x8xf32> to vector<2x8x8xf32>
    %142 = vector.shape_cast %141 : vector<2x8x8xf32> to vector<16x8xf32>
    %143 = arith.truncf %142 : vector<16x8xf32> to vector<16x8xbf16>
    %c0_162 = arith.constant 0 : index
    %c0_163 = arith.constant 0 : index
    %c0_164 = arith.constant 0 : index
    %c0_165 = arith.constant 0 : index
    %144 = vector.load %arg7[%c0_162, %c0_163, %c0_164, %c0_165] : memref<1x4x8x32xbf16, #tpu.memory_space<vmem>>, vector<1x1x8x32xbf16>
    %145 = vector.shape_cast %144 : vector<1x1x8x32xbf16> to vector<8x32xbf16>
    %cst_166 = arith.constant dense<0.000000e+00> : vector<16x32xf32>
    %146 = tpu.matmul %143, %145, %cst_166 {dimension_numbers = #tpu.dot_dimension_numbers<[1], [0], [0], [1], [0, 0, 1, 1], [], []>} : vector<16x8xbf16>, vector<8x32xbf16>, vector<16x32xf32> -> vector<16x32xf32>
    %147 = arith.addf %140, %146 : vector<16x32xf32>
    %148 = vector.extract_strided_slice %139 {offsets = [2, 0, 0], sizes = [2, 8, 8], strides = [1, 1, 1]} : vector<8x8x8xf32> to vector<2x8x8xf32>
    %149 = vector.shape_cast %148 : vector<2x8x8xf32> to vector<16x8xf32>
    %150 = arith.truncf %149 : vector<16x8xf32> to vector<16x8xbf16>
    %c0_167 = arith.constant 0 : index
    %c1_168 = arith.constant 1 : index
    %c0_169 = arith.constant 0 : index
    %c0_170 = arith.constant 0 : index
    %151 = vector.load %arg7[%c0_167, %c1_168, %c0_169, %c0_170] : memref<1x4x8x32xbf16, #tpu.memory_space<vmem>>, vector<1x1x8x32xbf16>
    %152 = vector.shape_cast %151 : vector<1x1x8x32xbf16> to vector<8x32xbf16>
    %cst_171 = arith.constant dense<0.000000e+00> : vector<16x32xf32>
    %153 = tpu.matmul %150, %152, %cst_171 {dimension_numbers = #tpu.dot_dimension_numbers<[1], [0], [0], [1], [0, 0, 1, 1], [], []>} : vector<16x8xbf16>, vector<8x32xbf16>, vector<16x32xf32> -> vector<16x32xf32>
    %154 = arith.addf %147, %153 : vector<16x32xf32>
    %155 = vector.extract_strided_slice %139 {offsets = [4, 0, 0], sizes = [2, 8, 8], strides = [1, 1, 1]} : vector<8x8x8xf32> to vector<2x8x8xf32>
    %156 = vector.shape_cast %155 : vector<2x8x8xf32> to vector<16x8xf32>
    %157 = arith.truncf %156 : vector<16x8xf32> to vector<16x8xbf16>
    %c0_172 = arith.constant 0 : index
    %c2_173 = arith.constant 2 : index
    %c0_174 = arith.constant 0 : index
    %c0_175 = arith.constant 0 : index
    %158 = vector.load %arg7[%c0_172, %c2_173, %c0_174, %c0_175] : memref<1x4x8x32xbf16, #tpu.memory_space<vmem>>, vector<1x1x8x32xbf16>
    %159 = vector.shape_cast %158 : vector<1x1x8x32xbf16> to vector<8x32xbf16>
    %cst_176 = arith.constant dense<0.000000e+00> : vector<16x32xf32>
    %160 = tpu.matmul %157, %159, %cst_176 {dimension_numbers = #tpu.dot_dimension_numbers<[1], [0], [0], [1], [0, 0, 1, 1], [], []>} : vector<16x8xbf16>, vector<8x32xbf16>, vector<16x32xf32> -> vector<16x32xf32>
    %161 = arith.addf %154, %160 : vector<16x32xf32>
    %162 = vector.extract_strided_slice %139 {offsets = [6, 0, 0], sizes = [2, 8, 8], strides = [1, 1, 1]} : vector<8x8x8xf32> to vector<2x8x8xf32>
    %163 = vector.shape_cast %162 : vector<2x8x8xf32> to vector<16x8xf32>
    %164 = arith.truncf %163 : vector<16x8xf32> to vector<16x8xbf16>
    %c0_177 = arith.constant 0 : index
    %c3_178 = arith.constant 3 : index
    %c0_179 = arith.constant 0 : index
    %c0_180 = arith.constant 0 : index
    %165 = vector.load %arg7[%c0_177, %c3_178, %c0_179, %c0_180] : memref<1x4x8x32xbf16, #tpu.memory_space<vmem>>, vector<1x1x8x32xbf16>
    %166 = vector.shape_cast %165 : vector<1x1x8x32xbf16> to vector<8x32xbf16>
    %cst_181 = arith.constant dense<0.000000e+00> : vector<16x32xf32>
    %167 = tpu.matmul %164, %166, %cst_181 {dimension_numbers = #tpu.dot_dimension_numbers<[1], [0], [0], [1], [0, 0, 1, 1], [], []>} : vector<16x8xbf16>, vector<8x32xbf16>, vector<16x32xf32> -> vector<16x32xf32>
    %168 = arith.addf %161, %167 : vector<16x32xf32>
    %169 = vector.broadcast %6 : vector<1x32xf32> to vector<16x32xf32>
    %170 = arith.addf %168, %169 : vector<16x32xf32>
    %171 = arith.addf %3, %170 : vector<16x32xf32>
    %cst_182 = arith.constant dense<0.000000e+00> : vector<16xf32>
    %172 = vector.multi_reduction <add>, %171, %cst_182 [1] : vector<16x32xf32> to vector<16xf32>
    %173 = vector.shape_cast %172 : vector<16xf32> to vector<16x1xf32>
    %cst_183 = arith.constant 3.200000e+01 : f32
    %174 = vector.broadcast %cst_183 : f32 to vector<16x1xf32>
    %175 = arith.divf %173, %174 : vector<16x1xf32>
    %176 = vector.broadcast %175 : vector<16x1xf32> to vector<16x32xf32>
    %177 = arith.subf %171, %176 : vector<16x32xf32>
    %178 = arith.mulf %177, %177 : vector<16x32xf32>
    %cst_184 = arith.constant dense<0.000000e+00> : vector<16xf32>
    %179 = vector.multi_reduction <add>, %178, %cst_184 [1] : vector<16x32xf32> to vector<16xf32>
    %180 = vector.shape_cast %179 : vector<16xf32> to vector<16x1xf32>
    %cst_185 = arith.constant 3.200000e+01 : f32
    %181 = vector.broadcast %cst_185 : f32 to vector<16x1xf32>
    %182 = arith.divf %180, %181 : vector<16x1xf32>
    %183 = vector.broadcast %175 : vector<16x1xf32> to vector<16x32xf32>
    %184 = arith.subf %171, %183 : vector<16x32xf32>
    %cst_186 = arith.constant 9.99999974E-6 : f32
    %185 = vector.broadcast %cst_186 : f32 to vector<16x1xf32>
    %186 = arith.addf %182, %185 : vector<16x1xf32>
    %187 = math.rsqrt %186 : vector<16x1xf32>
    %188 = vector.broadcast %187 : vector<16x1xf32> to vector<16x32xf32>
    %189 = arith.mulf %184, %188 : vector<16x32xf32>
    %190 = vector.broadcast %8 : vector<1x32xf32> to vector<16x32xf32>
    %191 = arith.mulf %189, %190 : vector<16x32xf32>
    %192 = vector.broadcast %10 : vector<1x32xf32> to vector<16x32xf32>
    %193 = arith.addf %191, %192 : vector<16x32xf32>
    %194 = arith.truncf %193 : vector<16x32xf32> to vector<16x32xbf16>
    %c0_187 = arith.constant 0 : index
    %c0_188 = arith.constant 0 : index
    %c0_189 = arith.constant 0 : index
    %195 = vector.load %arg8[%c0_187, %c0_188, %c0_189] : memref<1x32x128xbf16, #tpu.memory_space<vmem>>, vector<1x32x128xbf16>
    %196 = vector.shape_cast %195 : vector<1x32x128xbf16> to vector<32x128xbf16>
    %cst_190 = arith.constant dense<0.000000e+00> : vector<16x128xf32>
    %197 = tpu.matmul %194, %196, %cst_190 {dimension_numbers = #tpu.dot_dimension_numbers<[1], [0], [0], [1], [0, 0, 1, 1], [], []>} : vector<16x32xbf16>, vector<32x128xbf16>, vector<16x128xf32> -> vector<16x128xf32>
    %c0_191 = arith.constant 0 : index
    %c0_192 = arith.constant 0 : index
    %c0_193 = arith.constant 0 : index
    %198 = vector.load %arg9[%c0_191, %c0_192, %c0_193] : memref<1x1x128xf32, #tpu.memory_space<vmem>>, vector<1x1x128xf32>
    %199 = vector.shape_cast %198 : vector<1x1x128xf32> to vector<1x128xf32>
    %200 = vector.broadcast %199 : vector<1x128xf32> to vector<16x128xf32>
    %201 = arith.addf %197, %200 : vector<16x128xf32>
    %cst_194 = arith.constant 0.000000e+00 : f32
    %202 = vector.broadcast %cst_194 : f32 to vector<16x128xf32>
    %203 = arith.maximumf %201, %202 : vector<16x128xf32>
    %204 = arith.truncf %203 : vector<16x128xf32> to vector<16x128xbf16>
    %c0_195 = arith.constant 0 : index
    %c0_196 = arith.constant 0 : index
    %c0_197 = arith.constant 0 : index
    %205 = vector.load %arg10[%c0_195, %c0_196, %c0_197] : memref<1x128x32xbf16, #tpu.memory_space<vmem>>, vector<1x128x32xbf16>
    %206 = vector.shape_cast %205 : vector<1x128x32xbf16> to vector<128x32xbf16>
    %cst_198 = arith.constant dense<0.000000e+00> : vector<16x32xf32>
    %207 = tpu.matmul %204, %206, %cst_198 {dimension_numbers = #tpu.dot_dimension_numbers<[1], [0], [0], [1], [0, 0, 1, 1], [], []>} : vector<16x128xbf16>, vector<128x32xbf16>, vector<16x32xf32> -> vector<16x32xf32>
    %208 = vector.broadcast %12 : vector<1x32xf32> to vector<16x32xf32>
    %209 = arith.addf %207, %208 : vector<16x32xf32>
    %210 = arith.addf %193, %209 : vector<16x32xf32>
    %cst_199 = arith.constant dense<0.000000e+00> : vector<16xf32>
    %211 = vector.multi_reduction <add>, %210, %cst_199 [1] : vector<16x32xf32> to vector<16xf32>
    %212 = vector.shape_cast %211 : vector<16xf32> to vector<16x1xf32>
    %cst_200 = arith.constant 3.200000e+01 : f32
    %213 = vector.broadcast %cst_200 : f32 to vector<16x1xf32>
    %214 = arith.divf %212, %213 : vector<16x1xf32>
    %215 = vector.broadcast %214 : vector<16x1xf32> to vector<16x32xf32>
    %216 = arith.subf %210, %215 : vector<16x32xf32>
    %217 = arith.mulf %216, %216 : vector<16x32xf32>
    %cst_201 = arith.constant dense<0.000000e+00> : vector<16xf32>
    %218 = vector.multi_reduction <add>, %217, %cst_201 [1] : vector<16x32xf32> to vector<16xf32>
    %219 = vector.shape_cast %218 : vector<16xf32> to vector<16x1xf32>
    %cst_202 = arith.constant 3.200000e+01 : f32
    %220 = vector.broadcast %cst_202 : f32 to vector<16x1xf32>
    %221 = arith.divf %219, %220 : vector<16x1xf32>
    %222 = vector.broadcast %214 : vector<16x1xf32> to vector<16x32xf32>
    %223 = arith.subf %210, %222 : vector<16x32xf32>
    %cst_203 = arith.constant 9.99999974E-6 : f32
    %224 = vector.broadcast %cst_203 : f32 to vector<16x1xf32>
    %225 = arith.addf %221, %224 : vector<16x1xf32>
    %226 = math.rsqrt %225 : vector<16x1xf32>
    %227 = vector.broadcast %226 : vector<16x1xf32> to vector<16x32xf32>
    %228 = arith.mulf %223, %227 : vector<16x32xf32>
    %229 = vector.broadcast %14 : vector<1x32xf32> to vector<16x32xf32>
    %230 = arith.mulf %228, %229 : vector<16x32xf32>
    %231 = vector.broadcast %16 : vector<1x32xf32> to vector<16x32xf32>
    %232 = arith.addf %230, %231 : vector<16x32xf32>
    %c0_204 = arith.constant 0 : index
    %c0_205 = arith.constant 0 : index
    %233 = vector.load %arg13[%c0_204, %c0_205] : memref<16x32xf32, #tpu.memory_space<vmem>>, vector<16x32xf32>
    tpu.vector_store %arg13[%c0_204, %c0_205], %232 {strides = array<i32>} : memref<16x32xf32, #tpu.memory_space<vmem>>, vector<16x32xf32>,
    %c1_i32 = arith.constant 1 : i32
    %234 = arith.cmpi eq, %arg1, %c1_i32 : i32
    %235 = arith.extui %234 : i1 to i32
    %c0_i32_206 = arith.constant 0 : i32
    %236 = arith.cmpi ne, %235, %c0_i32_206 : i32
    scf.if %236 {
      %237 = vector.shape_cast %232 : vector<16x32xf32> to vector<2x8x32xf32>
      %c0_207 = arith.constant 0 : index
      %c0_208 = arith.constant 0 : index
      %238 = vector.load %arg3[%c0_207, %c0_208] : memref<2x8xf32, #tpu.memory_space<vmem>>, vector<2x8xf32>
      %239 = vector.shape_cast %238 : vector<2x8xf32> to vector<2x8x1xf32>
      %240 = vector.broadcast %239 : vector<2x8x1xf32> to vector<2x8x32xf32>
      %241 = arith.mulf %237, %240 : vector<2x8x32xf32>
      %cst_209 = arith.constant dense<0.000000e+00> : vector<2x32xf32>
      %242 = vector.multi_reduction <add>, %241, %cst_209 [1] : vector<2x8x32xf32> to vector<2x32xf32>
      %c0_210 = arith.constant 0 : index
      %c0_211 = arith.constant 0 : index
      %243 = vector.load %arg12[%c0_210, %c0_211] : memref<2x32xf32, #tpu.memory_space<vmem>>, vector<2x32xf32>
      tpu.vector_store %arg12[%c0_210, %c0_211], %242 {strides = array<i32>} : memref<2x32xf32, #tpu.memory_space<vmem>>, vector<2x32xf32>,
    } else {
    }
    return
  }
  func.func @transform_0(%arg0: i32, %arg1: i32) -> (i32, i32) {
    %c0_i32 = arith.constant 0 : i32
    %c0_i32_0 = arith.constant 0 : i32
    return %arg0, %c0_i32 : i32, i32
  }
  func.func @transform_1(%arg0: i32, %arg1: i32) -> (i32, i32) {
    %c0_i32 = arith.constant 0 : i32
    %c0_i32_0 = arith.constant 0 : i32
    return %arg0, %c0_i32 : i32, i32
  }
  func.func @transform_2(%arg0: i32, %arg1: i32) -> (i32, i32, i32, i32) {
    %c0_i32 = arith.constant 0 : i32
    %c0_i32_0 = arith.constant 0 : i32
    %c0_i32_1 = arith.constant 0 : i32
    %c0_i32_2 = arith.constant 0 : i32
    return %c0_i32, %arg0, %c0_i32_0, %c0_i32_1 : i32, i32, i32, i32
  }
  func.func @transform_3(%arg0: i32, %arg1: i32) -> (i32, i32, i32, i32, i32) {
    %c0_i32 = arith.constant 0 : i32
    %c0_i32_0 = arith.constant 0 : i32
    %c0_i32_1 = arith.constant 0 : i32
    %c0_i32_2 = arith.constant 0 : i32
    %c0_i32_3 = arith.constant 0 : i32
    return %arg1, %c0_i32, %c0_i32_0, %c0_i32_1, %c0_i32_2 : i32, i32, i32, i32, i32
  }
  func.func @transform_4(%arg0: i32, %arg1: i32) -> (i32, i32, i32, i32, i32) {
    %c0_i32 = arith.constant 0 : i32
    %c0_i32_0 = arith.constant 0 : i32
    %c0_i32_1 = arith.constant 0 : i32
    %c0_i32_2 = arith.constant 0 : i32
    %c0_i32_3 = arith.constant 0 : i32
    return %arg1, %c0_i32, %c0_i32_0, %c0_i32_1, %c0_i32_2 : i32, i32, i32, i32, i32
  }
  func.func @transform_5(%arg0: i32, %arg1: i32) -> (i32, i32, i32, i32) {
    %c0_i32 = arith.constant 0 : i32
    %c0_i32_0 = arith.constant 0 : i32
    %c0_i32_1 = arith.constant 0 : i32
    %c0_i32_2 = arith.constant 0 : i32
    return %arg1, %c0_i32, %c0_i32_0, %c0_i32_1 : i32, i32, i32, i32
  }
  func.func @transform_6(%arg0: i32, %arg1: i32) -> (i32, i32, i32) {
    %c0_i32 = arith.constant 0 : i32
    %c0_i32_0 = arith.constant 0 : i32
    %c0_i32_1 = arith.constant 0 : i32
    return %arg1, %c0_i32, %c0_i32_0 : i32, i32, i32
  }
  func.func @transform_7(%arg0: i32, %arg1: i32) -> (i32, i32, i32) {
    %c0_i32 = arith.constant 0 : i32
    %c0_i32_0 = arith.constant 0 : i32
    %c0_i32_1 = arith.constant 0 : i32
    return %arg1, %c0_i32, %c0_i32_0 : i32, i32, i32
  }
  func.func @transform_8(%arg0: i32, %arg1: i32) -> (i32, i32, i32) {
    %c0_i32 = arith.constant 0 : i32
    %c0_i32_0 = arith.constant 0 : i32
    %c0_i32_1 = arith.constant 0 : i32
    return %arg1, %c0_i32, %c0_i32_0 : i32, i32, i32
  }
  func.func @transform_9(%arg0: i32, %arg1: i32) -> (i32, i32, i32, i32) {
    %c0_i32 = arith.constant 0 : i32
    %c0_i32_0 = arith.constant 0 : i32
    %c0_i32_1 = arith.constant 0 : i32
    %c0_i32_2 = arith.constant 0 : i32
    return %arg1, %c0_i32, %c0_i32_0, %c0_i32_1 : i32, i32, i32, i32
  }
  func.func @transform_10(%arg0: i32, %arg1: i32) -> (i32, i32) {
    %c0_i32 = arith.constant 0 : i32
    %c0_i32_0 = arith.constant 0 : i32
    return %arg0, %c0_i32 : i32, i32
  }
}

</mosaic_0001>

<bundles_post_ra>
// kernel: tpu_custom_call.1
= control target key start
LH: loop header
LB: loop body
LE: loop exit
PB: predicated region body
PF: predicated region fallthrough
CT: control target
= control target key end

     0   :  { %s2764_s0 = inlined_call_operand.vmem [shape: f32[16,32], index: 0, kind: input, shape index: {}]   ;;  %s2765_s1 = inlined_call_operand.vmem [shape: f32[2,8], index: 1, kind: input, shape index: {}]   ;;  %s2766_s2 = inlined_call_operand.vmem [shape: f32[4,2,8,8], index: 2, kind: input, shape index: {}]   ;;  %s2767_s3 = inlined_call_operand.vmem [shape: bf16[2,3,4,32,8], index: 3, kind: input, shape index: {}]   ;;  %s2768_s4 = inlined_call_operand.vmem [shape: f32[2,3,4,1,8], index: 4, kind: input, shape index: {}]   ;;  %s2769_s5 = inlined_call_operand.vmem [shape: bf16[2,4,8,32], index: 5, kind: input, shape index: {}]   ;;  %s2770_s6 = inlined_call_operand.vmem [shape: bf16[2,32,128], index: 6, kind: input, shape index: {}]   ;;  %s2771_s7 = inlined_call_operand.vmem [shape: f32[2,1,128], index: 7, kind: input, shape index: {}]   ;;  %s2772_s8 = inlined_call_operand.vmem [shape: bf16[2,128,32], index: 8, kind: input, shape index: {}]   ;;  %s2773_s9 = inlined_call_operand.vmem [shape: f32[2,6,1,32], index: 9, kind: input, shape index: {}]   ;;  %s2774_s10 = inlined_call_operand.hbm [shape: f32[2,32], index: 10, kind: output, shape index: {}]  }
   0x1   :  { %2776 = sst [smem:[#allocation8_spill]] %s2769_s5 }
   0x2   :  { %2777 = sst [smem:[#allocation9_spill]] %s2774_s10 }
   0x3   :  { %15 = vsyncpa [#allocation4], 0  ;;  %s2491_s13 = smov 0   ;;  %s2493_s14 = smov 0  }
   0x4   :  { %s2495_s15 = smov 0  }
   0x5 LB: > { %2778 = sst [smem:[#allocation6_spill]] %s2428_s14  ;;  %s30_s17 = sadd.s32 1, %s2428_s14  ;;  %s2432_s15 = sphi %s2495_s15, %s21_s15   ;;  %s2428_s14 = sphi %s2493_s14, %s2784_s14   ;;  %s2424_s13 = sphi %s2491_s13, %s2783_s13  }
   0x6   : > { %p31_p0 = scmp.ge.s32.totalorder %s30_s17, 2  ;;  %p1998_p1 = scmp.ge.s32.totalorder %s2432_s15, 1 }
   0x7   : > { %p412_p2 = scmp.lt.s32.totalorder %s2432_s15, 3 }
   0x8   : > { %s2786_s17 = smov (%p31_p0, %s30_s17), 0 }
   0x9   : > { %2779 = sst [smem:[#allocation7_spill]] %s2786_s17  ;;  %p413_p3 = pnand %p1998_p1, %p412_p2 }
   0xa   : > { %p501_p4 = scmp.lt.s32.totalorder (!%p413_p3), %s2424_s13, 1  ;;  %s2780_s5 = sld [smem:[#allocation8_spill]] (!%p413_p3) }
   0xb   : > { %416 = sbr.rel (%p413_p3) target bundleno = 1864 (0x748), region = 60  ;;  %p2006_p5 = scmp.ne.s32.totalorder (!%p413_p3), %s2424_s13, 0 }
  0x10   : > { %s2514_s18 = scalar_select %p501_p4, %s2424_s13, 1 }
  0x12   : > { %s2281_s19 = smul.u32 192, %s2514_s18  ;;  %s2244_s20 = sshll.u32 %s2514_s18, 4 }
  0x13   : > { %s2282_s21 = smul.u32 12, %s2514_s18  ;;  %s2522_s24 = scalar_lea.vmem %s2780_s5, %s2244_s20 }
  0x14   : > { %s2527_s27 = scalar_lea.vmem %s2767_s3, %s2281_s19  ;;  %s2532_s30 = scalar_lea.vmem %s2770_s6, %s2244_s20 }
  0x15   : > { %s2537_s16 = scalar_lea.vmem %s2768_s4, %s2282_s21  ;;  %s522_s22 = scalar_lea.vmem %s2771_s7, %s2514_s18 }
  0x16   : > { %s2246_s23 = sshll.u32 %s2514_s18, 6  ;;  %s2283_s5 = smul.u32 6, %s2514_s18 }
  0x17   : > { %s2548_s19 = scalar_lea.vmem %s2772_s8, %s2246_s23  ;;  %536 = sbr.rel (%p2006_p5) target bundleno = 31 (0x1f), region = 64 }
  0x18   : > { %s2553_s20 = scalar_lea.vmem %s2773_s9, %s2283_s5 }
  0x1c   : > { %v537_v0 = vld [vmem:[%s2764_s0] sm:$0xff]  ;;  %vm539_vm0 = vcmask 261120   ;;  %v538_v1 = vld [vmem:[%s2764_s0 + $0x8] sm:$0xff] }
  0x1d   : > { %540 = vst.msk [vmem:[#allocation2] sm:$0xff] %vm539_vm0, %v537_v0 }
  0x1e   : > { %541 = vst.msk [vmem:[#allocation2 + $0x8] sm:$0xff] %vm539_vm0, %v538_v1 }
  0x1f PF: > { %v2248_v2 = vld [vmem:[%s2527_s27 + $0x8] sm:$0xff]  ;;  %v2250_v3 = vld [vmem:[%s2527_s27 + $0x18] sm:$0xff]  ;;  %v2247_v6 = vld [vmem:[%s2527_s27] sm:$0xff]  ;;  %vm576_vm1 = vcmask 261120   ;;  %vm1022_vm2 = vcmask 64512   ;;  %vm1282_vm3 = vcmask 1043456  }
  0x20   : > { %v2254_v4 = vld [vmem:[%s2527_s27 + $0x38] sm:$0xff]  ;;  %586 = vmatpush.bf16.msra.mxu0 %v2248_v2  ;;  %622 = vmatpush.bf16.msra.mxu2 %v2250_v3  ;;  %v2249_v7 = vld [vmem:[%s2527_s27 + $0x10] sm:$0xff]  ;;  %v2252_v12 = vld [vmem:[%s2527_s27 + $0x28] sm:$0xff]  ;;  %p2239_p6 = scmp.ne.s32.totalorder %s2424_s13, 1 }
  0x21   : > { %v2258_v5 = vld [vmem:[%s2527_s27 + $0x58] sm:$0xff]  ;;  %694 = vmatpush.bf16.msra.mxu3 %v2254_v4  ;;  %v2253_v9 = vld [vmem:[%s2527_s27 + $0x30] sm:$0xff]  ;;  %v2256_v13 = vld [vmem:[%s2527_s27 + $0x48] sm:$0xff] }
  0x22   : > { %774 = vmatpush.bf16.msra.mxu1 %v2258_v5  ;;  %v2257_v10 = vld [vmem:[%s2527_s27 + $0x50] sm:$0xff]  ;;  %v2262_v15 = vld [vmem:[%s2527_s27 + $0x78] sm:$0xff]  ;;  %v2251_v16 = vld [vmem:[%s2527_s27 + $0x20] sm:$0xff] }
  0x23   : > { %v2255_v17 = vld [vmem:[%s2527_s27 + $0x40] sm:$0xff]  ;;  %v2261_v18 = vld [vmem:[%s2527_s27 + $0x70] sm:$0xff]  ;;  %v2260_v19 = vld [vmem:[%s2527_s27 + $0x68] sm:$0xff] }
  0x24   : > { %v2568_v8 = vld [vmem:[#allocation2] sm:$0xff]  ;;  %587 = vmatpush.bf16.msra.mxu0 %v2247_v6  ;;  %623 = vmatpush.bf16.msra.mxu2 %v2249_v7  ;;  %v2268_v21 = vld [vmem:[%s2527_s27 + $0xa8] sm:$0xff]  ;;  %v2270_v22 = vld [vmem:[%s2527_s27 + $0xb8] sm:$0xff] }
  0x25   : > { %v2572_v11 = vld [vmem:[#allocation2 + $0x8] sm:$0xff]  ;;  %695 = vmatpush.bf16.msra.mxu3 %v2253_v9  ;;  %v2259_v20 = vld [vmem:[%s2527_s27 + $0x60] sm:$0xff]  ;;  %v2269_v25 = vld [vmem:[%s2527_s27 + $0xb0] sm:$0xff] }
  0x26   : > { %v544_v14 = vpack.c.bf16 %v2572_v11, %v2568_v8  ;;  %775 = vmatpush.bf16.msra.mxu1 %v2257_v10  ;;  %v2267_v23 = vld [vmem:[%s2527_s27 + $0xa0] sm:$0xff]  ;;  %v2264_v24 = vld [vmem:[%s2527_s27 + $0x88] sm:$0xff]  ;;  %v2266_v27 = vld [vmem:[%s2527_s27 + $0x98] sm:$0xff] }
  0x27   : > { %v2263_v26 = vld [vmem:[%s2527_s27 + $0x80] sm:$0xff]  ;;  %v2265_v28 = vld [vmem:[%s2527_s27 + $0x90] sm:$0xff] }
  0x28   : > { %658 = vmatpush.bf16.msrb.mxu2 %v2252_v12  ;;  %738 = vmatpush.bf16.msrb.mxu0 %v2256_v13  ;;  %v2317_v29 = vld [vmem:[%s2537_s16 + $0x5] ss:$0 sm:$0xff]  ;;  %v2318_v33 = vld [vmem:[%s2537_s16 + $0x1] ss:$0 sm:$0xff]  ;;  %v2320_v45 = vld [vmem:[%s2537_s16 + $0x4] ss:$0 sm:$0xff] }
  0x29   : > { %2020 = vmatmul.msk.bf16.vlgmr.msra.gmra.mxu0 %vm576_vm1, %v544_v14  ;;  %2034 = vmatmul.msk.bf16.vlgmr.msra.gmra.mxu2 %vm576_vm1, %v544_v14  ;;  %v2316_v48 = vld [vmem:[%s2537_s16] ss:$0 sm:$0xff]  ;;  %v2322_v57 = vld [vmem:[%s2537_s16 + $0x7] ss:$0 sm:$0xff]  ;;  %v2319_v59 = vld [vmem:[%s2537_s16 + $0x3] ss:$0 sm:$0xff] }
  0x2a   : > { %2062 = vmatmul.msk.bf16.vlgmr.msra.gmra.mxu3 %vm576_vm1, %v544_v14  ;;  %2090 = vmatmul.msk.bf16.vlgmr.msra.gmra.mxu1 %vm576_vm1, %v544_v14 }
  0x2b   : > { %846 = vmatpush.bf16.msrb.mxu3 %v2262_v15  ;;  %918 = vmatpush.bf16.msrb.mxu1 %v2266_v27 }
  0x2c   : > { %659 = vmatpush.bf16.msrb.mxu2 %v2251_v16  ;;  %739 = vmatpush.bf16.msrb.mxu0 %v2255_v17 }
  0x2f   : > { %847 = vmatpush.bf16.msrb.mxu3 %v2261_v18  ;;  %919 = vmatpush.bf16.msrb.mxu1 %v2265_v28 }
  0x30   : > { %810 = vmatpush.bf16.msra.mxu2 %v2260_v19  ;;  %882 = vmatpush.bf16.msra.mxu0 %v2264_v24 }
  0x33   : > { %990 = vmatpush.bf16.msra.mxu3 %v2270_v22  ;;  %v2321_v22 = vld [vmem:[%s2537_s16 + $0x2] ss:$0 sm:$0xff] }
  0x34   : > { %811 = vmatpush.bf16.msra.mxu2 %v2259_v20  ;;  %883 = vmatpush.bf16.msra.mxu0 %v2263_v26  ;;  %v2323_v20 = vld [vmem:[%s2537_s16 + $0x6] ss:$0 sm:$0xff] }
  0x37   : > { %991 = vmatpush.bf16.msra.mxu3 %v2269_v25 }
  0x39   : > { %2048 = vmatmul.msk.bf16.vlgmr.msrb.gmra.mxu2 %vm576_vm1, %v544_v14  ;;  %2076 = vmatmul.msk.bf16.vlgmr.msrb.gmra.mxu0 %vm576_vm1, %v544_v14 }
  0x3a   : > { %2118 = vmatmul.msk.bf16.vlgmr.msrb.gmra.mxu3 %vm576_vm1, %v544_v14  ;;  %954 = vmatpush.bf16.msrb.mxu2 %v2268_v21 }
  0x3b   : > { %2146 = vmatmul.msk.bf16.vlgmr.msrb.gmra.mxu1 %vm576_vm1, %v544_v14 }
  0x3e   : > { %955 = vmatpush.bf16.msrb.mxu2 %v2267_v23 }
  0x49   : > { %2104 = vmatmul.msk.bf16.vlgmr.msra.gmra.mxu2 %vm576_vm1, %v544_v14  ;;  %2132 = vmatmul.msk.bf16.vlgmr.msra.gmra.mxu0 %vm576_vm1, %v544_v14 }
  0x4a   : > { %2174 = vmatmul.msk.bf16.vlgmr.msra.gmra.mxu3 %vm576_vm1, %v544_v14 }
  0x59   : > { %2160 = vmatmul.msk.bf16.vlgmr.msrb.gmra.mxu2 %vm576_vm1, %v544_v14 }
  0xa6   : > { %v589_v30 = vpop.f32.mrf.mxu0 }
  0xa7   : > { %v777_v31 = vpop.f32.mrf.mxu1  ;;  %v590_v54 = vadd.f32 %v2316_v48, %v589_v30 }
  0xa8   : > { %v778_v32 = vadd.f32 %v2317_v29, %v777_v31 }
  0xa9   : > { %v702_v61 = vmul.f32 0.35355338, %v590_v54 }
  0xaa   : > { %v1008_v34 = vpack.c.bf16 %v778_v32, %v778_v32 }
  0xab   : > { %v998_v4 = vpack.c.bf16 %v702_v61, %v702_v61 }
  0xac   : > { %v1065_v35 = vsel %vm1022_vm2, %v1008_v34, 0  ;;  %v625_v36 = vpop.f32.mrf.mxu2 }
  0xad   : > { %v626_v37 = vadd.f32 %v2318_v33, %v625_v36  ;;  %v697_v38 = vpop.f32.mrf.mxu3  ;;  %1074 = vmatpush.bf16.xpose.msra.mxu2 %v1065_v35 }
  0xae   : > { %v591_v39 = vpop.f32.mrf.mxu0  ;;  %v698_v2 = vadd.f32 %v2319_v59, %v697_v38 }
  0xaf   : > { %v704_v40 = vmul.f32 0.35355338, %v626_v37  ;;  %v779_v41 = vpop.f32.mrf.mxu1  ;;  %v592_v5 = vadd.f32 %v2316_v48, %v591_v39  ;;  %v2324_v39 = vld [vmem:[%s2537_s16 + $0xa] ss:$0 sm:$0xff] }
  0xb0   : > { %v780_v42 = vadd.f32 %v2317_v29, %v779_v41  ;;  %v708_v10 = vmul.f32 0.35355338, %v698_v2 }
  0xb1   : > { %v1000_v43 = vpack.c.bf16 %v704_v40, %v704_v40  ;;  %v703_v13 = vmul.f32 0.35355338, %v592_v5 }
  0xb2   : > { %v1009_v44 = vpack.c.bf16 %v780_v42, %v780_v42  ;;  %v1004_v16 = vpack.c.bf16 %v708_v10, %v708_v10  ;;  %v2326_v42 = vld [vmem:[%s2537_s16 + $0x8] ss:$0 sm:$0xff] }
  0xb3   : > { %v999_v19 = vpack.c.bf16 %v703_v13, %v703_v13  ;;  %v1016_v13 = vld [vmem:[%s2766_s2 + $0x10] sm:$0xff] }
  0xb4   : > { %v1084_v46 = vsel %vm1022_vm2, %v1009_v44, 0  ;;  %2177 = vmatmul.msk.bf16.vlgmr.msra.gmra.mxu2 %vm1022_vm2, %v1000_v43  ;;  %v627_v47 = vpop.f32.mrf.mxu2 }
  0xb5   : > { %v628_v49 = vadd.f32 %v2318_v33, %v627_v47  ;;  %v699_v50 = vpop.f32.mrf.mxu3  ;;  %1093 = vmatpush.bf16.xpose.msrb.mxu3 %v1084_v46 }
  0xb6   : > { %v741_v51 = vpop.f32.mrf.mxu0  ;;  %v700_v17 = vadd.f32 %v2319_v59, %v699_v50 }
  0xb7   : > { %v705_v52 = vmul.f32 0.35355338, %v628_v49  ;;  %v742_v53 = vadd.f32 %v2320_v45, %v741_v51 }
  0xb8   : > { %v709_v23 = vmul.f32 0.35355338, %v700_v17  ;;  %v1017_v17 = vld [vmem:[%s2766_s2 + $0x18] sm:$0xff] }
  0xb9   : > { %v1001_v55 = vpack.c.bf16 %v705_v52, %v705_v52  ;;  %v1006_v56 = vpack.c.bf16 %v742_v53, %v742_v53  ;;  %v2325_v52 = vld [vmem:[%s2537_s16 + $0xb] ss:$0 sm:$0xff] }
  0xba   : > { %v1005_v28 = vpack.c.bf16 %v709_v23, %v709_v23 }
  0xbb   : > { %v1027_v58 = vsel %vm1022_vm2, %v1006_v56, 0 }
  0xbc   : > { %2178 = vmatmul.msk.bf16.vlgmr.msrb.gmra.mxu3 %vm1022_vm2, %v1001_v55  ;;  %v661_v60 = vpop.f32.mrf.mxu2  ;;  %1036 = vmatpush.bf16.xpose.msrb.mxu0 %v1027_v58  ;;  %v921_v55 = vpop.f32.mrf.mxu1 }
  0xbd   : > { %v849_v62 = vpop.f32.mrf.mxu3  ;;  %v662_v26 = vadd.f32 %v2321_v22, %v661_v60 }
  0xbe   : > { %v850_v63 = vadd.f32 %v2322_v57, %v849_v62  ;;  %v743_v0 = vpop.f32.mrf.mxu0 }
  0xbf   : > { %v744_v1 = vadd.f32 %v2320_v45, %v743_v0  ;;  %v706_v30 = vmul.f32 0.35355338, %v662_v26  ;;  %v1015_v26 = vld [vmem:[%s2766_s2 + $0x8] sm:$0xff] }
  0xc0   : > { %v1012_v3 = vpack.c.bf16 %v850_v63, %v850_v63  ;;  %v2327_v63 = vld [vmem:[%s2537_s16 + $0x9] ss:$0 sm:$0xff] }
  0xc1   : > { %v1007_v6 = vpack.c.bf16 %v744_v1, %v744_v1  ;;  %v1002_v33 = vpack.c.bf16 %v706_v30, %v706_v30  ;;  %v922_v2 = vadd.f32 %v2327_v63, %v921_v55 }
  0xc2   : > { %v1141_v7 = vsel %vm1022_vm2, %v1012_v3, 0 }
  0xc3   : > { %v1046_v9 = vsel %vm1022_vm2, %v1007_v6, 0  ;;  %1150 = vmatpush.bf16.xpose.msrb.mxu2 %v1141_v7  ;;  %2175 = vmatmul.msk.bf16.vlgmr.msrb.gmra.mxu0 %vm1022_vm2, %v998_v4  ;;  %v1273_v5 = vpack.c.bf16 %v922_v2, %v922_v2 }
  0xc4   : > { %v663_v12 = vpop.f32.mrf.mxu2  ;;  %1055 = vmatpush.bf16.xpose.msra.mxu1 %v1046_v9  ;;  %v923_v3 = vpop.f32.mrf.mxu1 }
  0xc5   : > { %v851_v14 = vpop.f32.mrf.mxu3  ;;  %v664_v34 = vadd.f32 %v2321_v22, %v663_v12  ;;  %v924_v4 = vadd.f32 %v2327_v63, %v923_v3  ;;  %v1322_v10 = vsel %vm1282_vm3, %v1273_v5, 0 }
  0xc6   : > { %v852_v15 = vadd.f32 %v2322_v57, %v851_v14  ;;  %v885_v44 = vpop.f32.mrf.mxu0 }
  0xc7   : > { %v707_v37 = vmul.f32 0.35355338, %v664_v34  ;;  %v886_v45 = vadd.f32 %v2326_v42, %v885_v44  ;;  %v1274_v7 = vpack.c.bf16 %v924_v4, %v924_v4 }
  0xc8   : > { %v1013_v18 = vpack.c.bf16 %v852_v15, %v852_v15 }
  0xc9   : > { %v1003_v38 = vpack.c.bf16 %v707_v37, %v707_v37  ;;  %v1271_v47 = vpack.c.bf16 %v886_v45, %v886_v45  ;;  %v1341_v12 = vsel %vm1282_vm3, %v1274_v7, 0  ;;  %v1021_v37 = vld [vmem:[%s2766_s2 + $0x38] sm:$0xff] }
  0xca   : > { %v1160_v21 = vsel %vm1022_vm2, %v1013_v18, 0  ;;  %2181 = vmatmul.msk.bf16.vlgmr.msrb.gmra.mxu2 %vm1022_vm2, %v1004_v16  ;;  %v1014_v18 = vld [vmem:[%s2766_s2] sm:$0xff] }
  0xcb   : > { %1169 = vmatpush.bf16.xpose.msra.mxu3 %v1160_v21  ;;  %2176 = vmatmul.msk.bf16.vlgmr.msra.gmra.mxu1 %vm1022_vm2, %v999_v19  ;;  %v1284_v51 = vsel %vm1282_vm3, %v1271_v47, 0 }
  0xcc   : > { %v813_v24 = vpop.f32.mrf.mxu2  ;;  %1331 = vmatpush.bf16.msra.mxu2 %v1322_v10 }
  0xcd   : > { %v814_v25 = vadd.f32 %v2323_v20, %v813_v24  ;;  %v993_v50 = vpop.f32.mrf.mxu3 }
  0xce   : > { %v887_v54 = vpop.f32.mrf.mxu0  ;;  %v994_v57 = vadd.f32 %v2325_v52, %v993_v50 }
  0xcf   : > { %v1010_v27 = vpack.c.bf16 %v814_v25, %v814_v25  ;;  %v888_v56 = vadd.f32 %v2326_v42, %v887_v54 }
  0xd0   : > { %v1277_v0 = vpack.c.bf16 %v994_v57, %v994_v57 }
  0xd1   : > { %v1103_v29 = vsel %vm1022_vm2, %v1010_v27, 0  ;;  %v1272_v58 = vpack.c.bf16 %v888_v56, %v888_v56 }
  0xd2   : > { %2182 = vmatmul.msk.bf16.vlgmr.msra.gmra.mxu3 %vm1022_vm2, %v1005_v28  ;;  %1112 = vmatpush.bf16.xpose.msra.mxu0 %v1103_v29  ;;  %v1398_v6 = vsel %vm1282_vm3, %v1277_v0, 0 }
  0xd3   : > { %v1303_v61 = vsel %vm1282_vm3, %v1272_v58, 0  ;;  %1350 = vmatpush.bf16.msrb.mxu3 %v1341_v12  ;;  %1407 = vmatpush.bf16.msrb.mxu2 %v1398_v6 }
  0xd4   : > { %v815_v31 = vpop.f32.mrf.mxu2 }
  0xd5   : > { %v816_v32 = vadd.f32 %v2323_v20, %v815_v31  ;;  %v995_v60 = vpop.f32.mrf.mxu3  ;;  %v1020_v31 = vld [vmem:[%s2766_s2 + $0x30] sm:$0xff] }
  0xd6   : > { %v996_v62 = vadd.f32 %v2325_v52, %v995_v60 }
  0xd7   : > { %v1011_v35 = vpack.c.bf16 %v816_v32, %v816_v32 }
  0xd8   : > { %v1278_v1 = vpack.c.bf16 %v996_v62, %v996_v62 }
  0xd9   : > { %v1122_v36 = vsel %vm1022_vm2, %v1011_v35, 0  ;;  %2179 = vmatmul.msk.bf16.vlgmr.msra.gmra.mxu0 %vm1022_vm2, %v1002_v33 }
  0xda   : > { %1131 = vmatpush.bf16.xpose.msrb.mxu1 %v1122_v36  ;;  %1293 = vmatpush.bf16.msrb.mxu0 %v1284_v51  ;;  %v1417_v9 = vsel %vm1282_vm3, %v1278_v1, 0 }
  0xdb   : > { %1426 = vmatpush.bf16.msra.mxu3 %v1417_v9 }
  0xdc   : > { %v957_v40 = vpop.f32.mrf.mxu2 }
  0xdd   : > { %v958_v41 = vadd.f32 %v2324_v39, %v957_v40 }
  0xdf   : > { %v1275_v43 = vpack.c.bf16 %v958_v41, %v958_v41 }
  0xe1   : > { %2180 = vmatmul.msk.bf16.vlgmr.msrb.gmra.mxu1 %vm1022_vm2, %v1003_v38  ;;  %v1360_v48 = vsel %vm1282_vm3, %v1275_v43, 0  ;;  %v1018_v38 = vld [vmem:[%s2766_s2 + $0x20] sm:$0xff] }
  0xe2   : > { %1369 = vmatpush.bf16.msra.mxu0 %v1360_v48  ;;  %1312 = vmatpush.bf16.msra.mxu1 %v1303_v61 }
  0xe4   : > { %v959_v46 = vpop.f32.mrf.mxu2 }
  0xe5   : > { %v960_v49 = vadd.f32 %v2324_v39, %v959_v46  ;;  %v1019_v46 = vld [vmem:[%s2766_s2 + $0x28] sm:$0xff] }
  0xe7   : > { %v1276_v53 = vpack.c.bf16 %v960_v49, %v960_v49 }
  0xe9   : > { %v1379_v59 = vsel %vm1282_vm3, %v1276_v53, 0 }
  0xea   : > { %1388 = vmatpush.bf16.msrb.mxu1 %v1379_v59 }
 0x137   : > { %v1076_v14 = vpop.f32.mrf.mxu2 }
 0x138   : > { %v1077_v15 = vadd.f32 %v1076_v14, %v1016_v13 }
 0x13a   : > { %v1181_v16 = vsel %vm1022_vm2, %v1077_v15, -inf }
 0x13b   : > { %1182 = vmax.xlane.f32.xlu0 %v1181_v16 }
 0x13f   : > { %v1078_v19 = vpop.f32.mrf.mxu2  ;;  %v1095_v20 = vpop.f32.mrf.mxu3 }
 0x140   : > { %v1096_v21 = vadd.f32 %v1095_v20, %v1017_v17  ;;  %v1038_v22 = vpop.f32.mrf.mxu0 }
 0x141   : > { %v1039_v23 = vadd.f32 %v1038_v22, %v1014_v18 }
 0x142   : > { %v1184_v24 = vsel %vm1022_vm2, %v1096_v21, -inf }
 0x143   : > { %1185 = vmax.xlane.f32.xlu0 %v1184_v24  ;;  %v1175_v25 = vsel %vm1022_vm2, %v1039_v23, -inf }
 0x144   : > { %1176 = vmax.xlane.f32.xlu1 %v1175_v25 }
 0x147   : > { %v1097_v27 = vpop.f32.mrf.mxu3 }
 0x148   : > { %v1040_v28 = vpop.f32.mrf.mxu0  ;;  %v1057_v29 = vpop.f32.mrf.mxu1 }
 0x149   : > { %v1058_v30 = vadd.f32 %v1057_v29, %v1015_v26 }
 0x14b   : > { %v1178_v32 = vsel %vm1022_vm2, %v1058_v30, -inf }
 0x14c   : > { %1179 = vmax.xlane.f32.xlu1 %v1178_v32 }
 0x14d   : > { %v1152_v33 = vpop.f32.mrf.mxu2 }
 0x14e   : > { %v1153_v34 = vadd.f32 %v1152_v33, %v1020_v31 }
 0x150   : > { %v1193_v35 = vsel %vm1022_vm2, %v1153_v34, -inf  ;;  %v1059_v36 = vpop.f32.mrf.mxu1 }
 0x151   : > { %1194 = vmax.xlane.f32.xlu2 %v1193_v35 }
 0x155   : > { %v1154_v39 = vpop.f32.mrf.mxu2  ;;  %v1171_v40 = vpop.f32.mrf.mxu3 }
 0x156   : > { %v1172_v41 = vadd.f32 %v1171_v40, %v1021_v37  ;;  %v1114_v42 = vpop.f32.mrf.mxu0 }
 0x157   : > { %v1115_v43 = vadd.f32 %v1114_v42, %v1018_v38 }
 0x158   : > { %v1196_v44 = vsel %vm1022_vm2, %v1172_v41, -inf }
 0x159   : > { %1197 = vmax.xlane.f32.xlu2 %v1196_v44  ;;  %v1187_v45 = vsel %vm1022_vm2, %v1115_v43, -inf }
 0x15a   : > { %1188 = vmax.xlane.f32.xlu0 %v1187_v45 }
 0x15d   : > { %v1173_v47 = vpop.f32.mrf.mxu3 }
 0x15e   : > { %v1116_v48 = vpop.f32.mrf.mxu0  ;;  %v1133_v49 = vpop.f32.mrf.mxu1 }
 0x15f   : > { %v1134_v50 = vadd.f32 %v1133_v49, %v1019_v46 }
 0x161   : > { %v1190_v51 = vsel %vm1022_vm2, %v1134_v50, -inf }
 0x162   : > { %1191 = vmax.xlane.f32.xlu1 %v1190_v51 }
 0x166   : > { %v1135_v52 = vpop.f32.mrf.mxu1 }
 0x1ae   : > { %v1183_v53 = vpop.xlane.xlu0 %1182 }
 0x1af   : > { %v1201_v54 = vsub.f32 %v1077_v15, %v1183_v53 }
 0x1b1   : > { %v1211_v55 = vmul.f32 1.442695, %v1201_v54 }
 0x1b3   : > { %2335 = vpow2.f32 %v1211_v55 }
 0x1b6   : > { %v1186_v56 = vpop.xlane.xlu0 %1185 }
 0x1b7   : > { %v1202_v57 = vsub.f32 %v1096_v21, %v1186_v56  ;;  %v1177_v58 = vpop.xlane.xlu1 %1176 }
 0x1b8   : > { %v1199_v59 = vsub.f32 %v1039_v23, %v1177_v58 }
 0x1b9   : > { %v2336_v60 = vpop.eup %2335  ;;  %v1213_v61 = vmul.f32 1.442695, %v1202_v57 }
 0x1ba   : > { %v1207_v62 = vmul.f32 1.442695, %v1199_v59  ;;  %v1229_v63 = vsel %vm1022_vm2, %v2336_v60, 0.0 }
 0x1bb   : > { %2337 = vpow2.f32 %v1213_v61  ;;  %1230 = vadd.xlane.f32.xlu2 %v1229_v63  ;;  %v2191_v63 = vld [vmem:[%s2522_s24 + $0x4] sm:$0xf] }
 0x1bc   : > { %2339 = vpow2.f32 %v1207_v62 }
 0x1bf   : > { %v1180_v0 = vpop.xlane.xlu1 %1179 }
 0x1c0   : > { %v1200_v1 = vsub.f32 %v1058_v30, %v1180_v0  ;;  %v1441_v0 = vsel %vm1282_vm3, %v2191_v63, 0 }
 0x1c1   : > { %v2338_v2 = vpop.eup %2337 }
 0x1c2   : > { %v2340_v3 = vpop.eup %2339  ;;  %v1209_v4 = vmul.f32 1.442695, %v1200_v1  ;;  %v1232_v5 = vsel %vm1022_vm2, %v2338_v2, 0.0  ;;  %v1433_v1 = vld [vmem:[%s2522_s24] sm:$0xf] }
 0x1c3   : > { %1233 = vadd.xlane.f32.xlu0 %v1232_v5  ;;  %v1223_v6 = vsel %vm1022_vm2, %v2340_v3, 0.0  ;;  %v2194_v5 = vld [vmem:[%s2522_s24 + $0x8] sm:$0xf] }
 0x1c4   : > { %2341 = vpow2.f32 %v1209_v4  ;;  %v1195_v7 = vpop.xlane.xlu2 %1194  ;;  %1224 = vadd.xlane.f32.xlu1 %v1223_v6 }
 0x1c5   : > { %v1205_v9 = vsub.f32 %v1153_v34, %v1195_v7  ;;  %v1484_v7 = vsel %vm1282_vm3, %v2194_v5, 0  ;;  %v2271_v5 = vld [vmem:[%s2532_s30] sm:$0xff] }
 0x1c7   : > { %v1219_v10 = vmul.f32 1.442695, %v1205_v9 }
 0x1c9   : > { %2343 = vpow2.f32 %v1219_v10 }
 0x1ca   : > { %v2342_v12 = vpop.eup %2341 }
 0x1cb   : > { %v1226_v13 = vsel %vm1022_vm2, %v2342_v12, 0.0 }
 0x1cc   : > { %v1198_v14 = vpop.xlane.xlu2 %1197  ;;  %1227 = vadd.xlane.f32.xlu2 %v1226_v13 }
 0x1cd   : > { %v1206_v15 = vsub.f32 %v1172_v41, %v1198_v14  ;;  %v1189_v16 = vpop.xlane.xlu0 %1188 }
 0x1ce   : > { %v1203_v17 = vsub.f32 %v1115_v43, %v1189_v16 }
 0x1cf   : > { %v2344_v18 = vpop.eup %2343  ;;  %v1221_v19 = vmul.f32 1.442695, %v1206_v15 }
 0x1d0   : > { %v1215_v20 = vmul.f32 1.442695, %v1203_v17  ;;  %v1241_v21 = vsel %vm1022_vm2, %v2344_v18, 0.0 }
 0x1d1   : > { %2345 = vpow2.f32 %v1221_v19  ;;  %1242 = vadd.xlane.f32.xlu0 %v1241_v21 }
 0x1d2   : > { %2347 = vpow2.f32 %v1215_v20 }
 0x1d5   : > { %v1192_v22 = vpop.xlane.xlu1 %1191 }
 0x1d6   : > { %v1204_v23 = vsub.f32 %v1134_v50, %v1192_v22 }
 0x1d7   : > { %v2346_v24 = vpop.eup %2345 }
 0x1d8   : > { %v2348_v25 = vpop.eup %2347  ;;  %v1217_v26 = vmul.f32 1.442695, %v1204_v23  ;;  %v1244_v27 = vsel %vm1022_vm2, %v2346_v24, 0.0 }
 0x1d9   : > { %1245 = vadd.xlane.f32.xlu1 %v1244_v27  ;;  %v1235_v28 = vsel %vm1022_vm2, %v2348_v25, 0.0 }
 0x1da   : > { %2349 = vpow2.f32 %v1217_v26  ;;  %1236 = vadd.xlane.f32.xlu2 %v1235_v28 }
 0x1e0   : > { %v2350_v29 = vpop.eup %2349 }
 0x1e1   : > { %v1238_v30 = vsel %vm1022_vm2, %v2350_v29, 0.0 }
 0x1e2   : > { %1239 = vadd.xlane.f32.xlu0 %v1238_v30 }
 0x22e   : > { %v1231_v31 = vpop.xlane.xlu2 %1230 }
 0x22f   : > { %2351 = vrcp.f32 %v1231_v31 }
 0x235   : > { %v2352_v32 = vpop.eup %2351 }
 0x236   : > { %v1257_v33 = vmul.f32 %v2352_v32, %v2336_v60  ;;  %v1234_v34 = vpop.xlane.xlu0 %1233 }
 0x237   : > { %2353 = vrcp.f32 %v1234_v34  ;;  %v1225_v35 = vpop.xlane.xlu1 %1224 }
 0x238   : > { %v1265_v36 = vpack.c.bf16 %v1257_v33, %v1257_v33  ;;  %2355 = vrcp.f32 %v1225_v35  ;;  %v2328_v35 = vld [vmem:[%s2553_s20] ss:$0 sm:$0xff] }
 0x23a   : > { %2185 = vmatmul.msk.bf16.vlgmr.msra.gmra.mxu2 %vm1022_vm2, %v1265_v36 }
 0x23b   : > { %1493 = vmatpush.bf16.msra.mxu2 %v1484_v7 }
 0x23d   : > { %v2354_v37 = vpop.eup %2353 }
 0x23e   : > { %v2356_v38 = vpop.eup %2355  ;;  %v1258_v39 = vmul.f32 %v2354_v37, %v2338_v2  ;;  %v1461_v2 = vsel %vm1282_vm3, %v1433_v1, 0  ;;  %v2272_v1 = vld [vmem:[%s2532_s30 + $0x8] sm:$0xff] }
 0x23f   : > { %v1255_v40 = vmul.f32 %v2356_v38, %v2340_v3  ;;  %v1228_v41 = vpop.xlane.xlu2 %1227  ;;  %v2196_v3 = vld [vmem:[%s2522_s24 + $0xc] sm:$0xf] }
 0x240   : > { %v1266_v42 = vpack.c.bf16 %v1258_v39, %v1258_v39  ;;  %2357 = vrcp.f32 %v1228_v41  ;;  %v1509_v4 = vsel %vm1282_vm3, %v2196_v3, 0 }
 0x241   : > { %v1263_v43 = vpack.c.bf16 %v1255_v40, %v1255_v40 }
 0x242   : > { %2186 = vmatmul.msk.bf16.vlgmr.msrb.gmra.mxu3 %vm1022_vm2, %v1266_v42 }
 0x243   : > { %2183 = vmatmul.msk.bf16.vlgmr.msrb.gmra.mxu0 %vm1022_vm2, %v1263_v43  ;;  %1518 = vmatpush.bf16.msrb.mxu3 %v1509_v4 }
 0x244   : > { %v1243_v44 = vpop.xlane.xlu0 %1242  ;;  %1450 = vmatpush.bf16.msrb.mxu0 %v1441_v0 }
 0x245   : > { %2359 = vrcp.f32 %v1243_v44 }
 0x246   : > { %v2358_v45 = vpop.eup %2357 }
 0x247   : > { %v1256_v46 = vmul.f32 %v2358_v45, %v2342_v12 }
 0x249   : > { %v1264_v47 = vpack.c.bf16 %v1256_v46, %v1256_v46 }
 0x24b   : > { %v2360_v48 = vpop.eup %2359  ;;  %2184 = vmatmul.msk.bf16.vlgmr.msra.gmra.mxu1 %vm1022_vm2, %v1264_v47 }
 0x24c   : > { %v1261_v49 = vmul.f32 %v2360_v48, %v2344_v18  ;;  %v1246_v50 = vpop.xlane.xlu1 %1245  ;;  %1470 = vmatpush.bf16.msra.mxu1 %v1461_v2 }
 0x24d   : > { %2361 = vrcp.f32 %v1246_v50  ;;  %v1237_v51 = vpop.xlane.xlu2 %1236  ;;  %v2434_v50 = vmov 32.0  }
 0x24e   : > { %v1269_v52 = vpack.c.bf16 %v1261_v49, %v1261_v49  ;;  %2363 = vrcp.f32 %v1237_v51 }
 0x250   : > { %2189 = vmatmul.msk.bf16.vlgmr.msrb.gmra.mxu2 %vm1022_vm2, %v1269_v52 }
 0x253   : > { %v2362_v53 = vpop.eup %2361 }
 0x254   : > { %v2364_v54 = vpop.eup %2363  ;;  %v1262_v55 = vmul.f32 %v2362_v53, %v2346_v24 }
 0x255   : > { %v1259_v56 = vmul.f32 %v2364_v54, %v2348_v25  ;;  %v1240_v57 = vpop.xlane.xlu0 %1239 }
 0x256   : > { %v1270_v58 = vpack.c.bf16 %v1262_v55, %v1262_v55  ;;  %2365 = vrcp.f32 %v1240_v57 }
 0x257   : > { %v1267_v59 = vpack.c.bf16 %v1259_v56, %v1259_v56  ;;  %2367 = vrcp.f32 %v2434_v50  ;;  %v2332_v50 = vld [vmem:[%s2553_s20 + $0x3] ss:$0 sm:$0xff] }
 0x258   : > { %2190 = vmatmul.msk.bf16.vlgmr.msra.gmra.mxu3 %vm1022_vm2, %v1270_v58 }
 0x259   : > { %2187 = vmatmul.msk.bf16.vlgmr.msra.gmra.mxu0 %vm1022_vm2, %v1267_v59 }
 0x25a   : > { %1625 = vmatpush.bf16.msra.mxu0 %v2272_v1 }
 0x25c   : > { %v2366_v60 = vpop.eup %2365 }
 0x25d   : > { %v1260_v61 = vmul.f32 %v2366_v60, %v2350_v29  ;;  %v2368_v51 = vpop.eup %2367 }
 0x25e   : > { %v1541_v52 = vmul.f32 32.0, %v2368_v51  ;;  %vm1545_vm4 = vweird.f32 %v2368_v51  ;;  %1626 = vmatpush.bf16.msra.mxu0 %v2271_v5 }
 0x25f   : > { %v1268_v62 = vpack.c.bf16 %v1260_v61, %v1260_v61 }
 0x260   : > { %v1542_v53 = vsub.f32 1.0, %v1541_v52 }
 0x261   : > { %2188 = vmatmul.msk.bf16.vlgmr.msrb.gmra.mxu1 %vm1022_vm2, %v1268_v62 }
 0x262   : > { %v1543_v54 = vmul.f32 %v2368_v51, %v1542_v53 }
 0x2bd   : > { %v1333_v6 = vpop.f32.mrf.mxu2 }
 0x2c0   : > { %v1295_v9 = vpop.f32.mrf.mxu0 }
 0x2c5   : > { %v1335_v10 = vpop.f32.mrf.mxu2  ;;  %v1352_v12 = vpop.f32.mrf.mxu3 }
 0x2c6   : > { %v1434_v13 = vpack.c.bf16 %v1352_v12, %v1333_v6  ;;  %v2280_v6 = vld [vmem:[%s2548_s19 + $0x38] sm:$0xff]  ;;  %v2279_v10 = vld [vmem:[%s2548_s19 + $0x30] sm:$0xff] }
 0x2c7   : > { %1703 = vmatpush.bf16.msrb.mxu1 %v2280_v6 }
 0x2c8   : > { %2192 = vmatmul.msk.bf16.vlgmr.msrb.gmra.mxu0 %vm1022_vm2, %v1434_v13  ;;  %v1297_v14 = vpop.f32.mrf.mxu0  ;;  %v1314_v15 = vpop.f32.mrf.mxu1 }
 0x2c9   : > { %v1432_v16 = vpack.c.bf16 %v1314_v15, %v1295_v9  ;;  %v2278_v15 = vld [vmem:[%s2548_s19 + $0x28] sm:$0xff] }
 0x2cb   : > { %2193 = vmatmul.msk.bf16.vlgmr.msra.gmra.mxu1 %vm1022_vm2, %v1432_v16 }
 0x2cc   : > { %1704 = vmatpush.bf16.msrb.mxu1 %v2279_v10 }
 0x2cd   : > { %v1354_v17 = vpop.f32.mrf.mxu3 }
 0x2d0   : > { %v1316_v18 = vpop.f32.mrf.mxu1  ;;  %1705 = vmatpush.bf16.msrb.mxu1 %v2278_v15 }
 0x2d1   : > { %v2277_v18 = vld [vmem:[%s2548_s19 + $0x20] sm:$0xff] }
 0x2d3   : > { %v1409_v19 = vpop.f32.mrf.mxu2 }
 0x2d4   : > { %1706 = vmatpush.bf16.msrb.mxu1 %v2277_v18 }
 0x2d6   : > { %v1371_v20 = vpop.f32.mrf.mxu0 }
 0x2db   : > { %v1411_v21 = vpop.f32.mrf.mxu2  ;;  %v1428_v22 = vpop.f32.mrf.mxu3 }
 0x2dc   : > { %v1502_v23 = vpack.c.bf16 %v1428_v22, %v1409_v19 }
 0x2de   : > { %2197 = vmatmul.msk.bf16.vlgmr.msrb.gmra.mxu3 %vm1022_vm2, %v1502_v23  ;;  %v1373_v24 = vpop.f32.mrf.mxu0  ;;  %v1390_v25 = vpop.f32.mrf.mxu1 }
 0x2df   : > { %v1477_v26 = vpack.c.bf16 %v1390_v25, %v1371_v20 }
 0x2e1   : > { %2195 = vmatmul.msk.bf16.vlgmr.msra.gmra.mxu2 %vm1022_vm2, %v1477_v26 }
 0x2e3   : > { %v1430_v27 = vpop.f32.mrf.mxu3 }
 0x2e4   : > { %v2329_v27 = vld [vmem:[%s2553_s20 + $0x1] ss:$0 sm:$0xff] }
 0x2e6   : > { %v1392_v28 = vpop.f32.mrf.mxu1 }
 0x345   : > { %v1452_v30 = vpop.f32.mrf.mxu0 }
 0x348   : > { %v1472_v29 = vpop.f32.mrf.mxu1 }
 0x349   : > { %v1473_v31 = vadd.f32 %v1472_v29, %v1452_v30 }
 0x34d   : > { %v1454_v39 = vpop.f32.mrf.mxu0 }
 0x350   : > { %v1474_v37 = vpop.f32.mrf.mxu1 }
 0x351   : > { %v1475_v40 = vadd.f32 %v1474_v37, %v1454_v39  ;;  %v2275_v39 = vld [vmem:[%s2548_s19 + $0x10] sm:$0xff] }
 0x361   : > { %v1520_v32 = vpop.f32.mrf.mxu3 }
 0x364   : > { %v1495_v33 = vpop.f32.mrf.mxu2 }
 0x365   : > { %v1500_v34 = vadd.f32 %v1495_v33, %v1473_v31  ;;  %v2330_v31 = vld [vmem:[%s2553_s20 + $0x2] ss:$0 sm:$0xff] }
 0x367   : > { %v1525_v36 = vadd.f32 %v1520_v32, %v1500_v34 }
 0x369   : > { %v1530_v38 = vadd.f32 %v2328_v35, %v1525_v36  ;;  %v1522_v45 = vpop.f32.mrf.mxu3 }
 0x36b   : > { %v1532_v41 = vadd.f32 %v1530_v38, %v2568_v8  ;;  %v1544_v8 = vadd.f32 %v2368_v51, %v1543_v54  ;;  %v2276_v38 = vld [vmem:[%s2548_s19 + $0x18] sm:$0xff] }
 0x36c   : > { %v1497_v42 = vpop.f32.mrf.mxu2  ;;  %1707 = vmatpush.bf16.msrb.mxu1 %v2276_v38 }
 0x36d   : > { %v1501_v43 = vadd.f32 %v1497_v42, %v1475_v40  ;;  %v1534_v44 = vsel %vm576_vm1, %v1532_v41, 0.0  ;;  %v2705_v55 = vsel %vm1545_vm4, %v2368_v51, %v1544_v8  ;;  %v2274_v40 = vld [vmem:[%s2548_s19 + $0x8] sm:$0xff] }
 0x36e   : > { %1535 = vadd.xlane.f32.xlu1 %v1534_v44 }
 0x36f   : > { %v1526_v46 = vadd.f32 %v1522_v45, %v1501_v43  ;;  %v2331_v43 = vld [vmem:[%s522_s22] ss:$0 sm:$0xff] }
 0x370   : > { %1708 = vmatpush.bf16.msrb.mxu1 %v2275_v39 }
 0x371   : > { %v1531_v47 = vadd.f32 %v2328_v35, %v1526_v46 }
 0x373   : > { %v1533_v48 = vadd.f32 %v1531_v47, %v2572_v11 }
 0x374   : > { %1709 = vmatpush.bf16.msrb.mxu1 %v2274_v40 }
 0x375   : > { %v1537_v49 = vsel %vm576_vm1, %v1533_v48, 0.0 }
 0x376   : > { %1538 = vadd.xlane.f32.xlu2 %v1537_v49 }
 0x3e1   : > { %v1536_v56 = vpop.xlane.xlu1 %1535 }
 0x3e2   : > { %v1547_v57 = vmul.f32 %v2705_v55, %v1536_v56 }
 0x3e4   : > { %v1549_v58 = vsub.f32 %v1532_v41, %v1547_v57  ;;  %v2273_v41 = vld [vmem:[%s2548_s19] sm:$0xff] }
 0x3e5   : > { %1710 = vmatpush.bf16.msrb.mxu1 %v2273_v41 }
 0x3e6   : > { %v1551_v11 = vmul.f32 %v1549_v58, %v1549_v58 }
 0x3e8   : > { %v1553_v59 = vsel %vm576_vm1, %v1551_v11, 0.0 }
 0x3e9   : > { %1554 = vadd.xlane.f32.xlu0 %v1553_v59  ;;  %v1539_v60 = vpop.xlane.xlu2 %1538 }
 0x3ea   : > { %v1548_v61 = vmul.f32 %v2705_v55, %v1539_v60 }
 0x3ec   : > { %v1550_v62 = vsub.f32 %v1533_v48, %v1548_v61 }
 0x3ee   : > { %v1552_v63 = vmul.f32 %v1550_v62, %v1550_v62 }
 0x3f0   : > { %v1556_v0 = vsel %vm576_vm1, %v1552_v63, 0.0 }
 0x3f1   : > { %1557 = vadd.xlane.f32.xlu1 %v1556_v0 }
 0x45c   : > { %v1555_v2 = vpop.xlane.xlu0 %1554 }
 0x45d   : > { %v1559_v3 = vmul.f32 %v1555_v2, %v2705_v55 }
 0x45f   : > { %v1561_v4 = vadd.f32 1e-05, %v1559_v3 }
 0x461   : > { %2369 = vrsqrt.f32 %v1561_v4  ;;  %vm1569_vm6 = vweird.f32 %v1561_v4 }
 0x464   : > { %v1558_v7 = vpop.xlane.xlu1 %1557 }
 0x465   : > { %v1560_v9 = vmul.f32 %v1558_v7, %v2705_v55 }
 0x467   : > { %v2370_v12 = vpop.eup %2369  ;;  %v1562_v13 = vadd.f32 1e-05, %v1560_v9 }
 0x468   : > { %v1564_v14 = vmul.f32 %v2370_v12, %v1561_v4  ;;  %vm1570_vm5 = vweird.f32 %v2370_v12 }
 0x469   : > { %2371 = vrsqrt.f32 %v1562_v13  ;;  %vm1571_vm7 = vmor %vm1569_vm6, %vm1570_vm5  ;;  %vm1579_vm9 = vweird.f32 %v1562_v13 }
 0x46a   : > { %v1565_v16 = vmul.f32 %v2370_v12, %v1564_v14 }
 0x46c   : > { %v1566_v17 = vmul.f32 0.5, %v1565_v16 }
 0x46e   : > { %v1567_v19 = vsub.f32 1.5, %v1566_v17 }
 0x46f   : > { %v2372_v20 = vpop.eup %2371 }
 0x470   : > { %v1568_v21 = vmul.f32 %v2370_v12, %v1567_v19  ;;  %v1574_v22 = vmul.f32 %v2372_v20, %v1562_v13  ;;  %vm1580_vm8 = vweird.f32 %v2372_v20 }
 0x471   : > { %vm1581_vm10 = vmor %vm1579_vm9, %vm1580_vm8 }
 0x472   : > { %v1575_v23 = vmul.f32 %v2372_v20, %v1574_v22  ;;  %v1572_v24 = vsel %vm1571_vm7, %v2370_v12, %v1568_v21 }
 0x473   : > { %v1583_v28 = vmul.f32 %v1572_v24, %v1549_v58 }
 0x474   : > { %v1576_v25 = vmul.f32 0.5, %v1575_v23  ;;  %v2334_v23 = vld [vmem:[%s2553_s20 + $0x5] ss:$0 sm:$0xff] }
 0x475   : > { %v1588_v32 = vmul.f32 %v2329_v27, %v1583_v28 }
 0x476   : > { %v1577_v26 = vsub.f32 1.5, %v1576_v25 }
 0x477   : > { %v1593_v35 = vadd.f32 %v2330_v31, %v1588_v32 }
 0x478   : > { %v1578_v29 = vmul.f32 %v2372_v20, %v1577_v26 }
 0x47a   : > { %v1582_v30 = vsel %vm1581_vm10, %v2372_v20, %v1578_v29  ;;  %v2333_v20 = vld [vmem:[%s2553_s20 + $0x4] ss:$0 sm:$0xff] }
 0x47b   : > { %v1584_v33 = vmul.f32 %v1582_v30, %v1550_v62 }
 0x47d   : > { %v1589_v34 = vmul.f32 %v2329_v27, %v1584_v33 }
 0x47f   : > { %v1594_v36 = vadd.f32 %v2330_v31, %v1589_v34 }
 0x481   : > { %v1595_v37 = vpack.c.bf16 %v1594_v36, %v1593_v35 }
 0x483   : > { %2206 = vmatmul.msk.bf16.vlgmr.msra.gmra.mxu0 %vm576_vm1, %v1595_v37 }
 0x500   : > { %v1628_v42 = vpop.f32.mrf.mxu0 }
 0x501   : > { %v1629_v44 = vadd.f32 %v2331_v43, %v1628_v42 }
 0x503   : > { %v1633_v47 = vmax.f32 %v1629_v44, 0.0 }
 0x508   : > { %v1630_v45 = vpop.f32.mrf.mxu0 }
 0x509   : > { %v1631_v46 = vadd.f32 %v2331_v43, %v1630_v45 }
 0x50b   : > { %v1634_v48 = vmax.f32 %v1631_v46, 0.0 }
 0x50d   : > { %v1635_v49 = vpack.c.bf16 %v1634_v48, %v1633_v47 }
 0x50f   : > { %1711 = vmatmul.bf16.vlgmr.msrb.gmra.mxu1 %v1635_v49 }
 0x58c   : > { %v1712_v51 = vpop.f32.mrf.mxu1 }
 0x58d   : > { %v1713_v52 = vadd.f32 %v2332_v50, %v1712_v51 }
 0x58f   : > { %v1717_v53 = vadd.f32 %v1713_v52, %v1593_v35 }
 0x591   : > { %v1719_v54 = vsel %vm576_vm1, %v1717_v53, 0.0 }
 0x592   : > { %1720 = vadd.xlane.f32.xlu2 %v1719_v54 }
 0x594   : > { %v1714_v8 = vpop.f32.mrf.mxu1 }
 0x595   : > { %v1715_v56 = vadd.f32 %v2332_v50, %v1714_v8 }
 0x597   : > { %v1718_v57 = vadd.f32 %v1715_v56, %v1594_v36 }
 0x599   : > { %v1722_v58 = vsel %vm576_vm1, %v1718_v57, 0.0 }
 0x59a   : > { %1723 = vadd.xlane.f32.xlu0 %v1722_v58 }
 0x605   : > { %v1721_v11 = vpop.xlane.xlu2 %1720 }
 0x606   : > { %v1725_v59 = vmul.f32 %v1721_v11, %v2705_v55 }
 0x608   : > { %v1727_v60 = vsub.f32 %v1717_v53, %v1725_v59 }
 0x60a   : > { %v1729_v61 = vmul.f32 %v1727_v60, %v1727_v60 }
 0x60c   : > { %v1731_v62 = vsel %vm576_vm1, %v1729_v61, 0.0 }
 0x60d   : > { %v1724_v63 = vpop.xlane.xlu0 %1723  ;;  %1732 = vadd.xlane.f32.xlu1 %v1731_v62 }
 0x60e   : > { %v1726_v0 = vmul.f32 %v1724_v63, %v2705_v55 }
 0x610   : > { %v1728_v1 = vsub.f32 %v1718_v57, %v1726_v0 }
 0x612   : > { %v1730_v2 = vmul.f32 %v1728_v1, %v1728_v1 }
 0x614   : > { %v1734_v3 = vsel %vm576_vm1, %v1730_v2, 0.0 }
 0x615   : > { %1735 = vadd.xlane.f32.xlu2 %v1734_v3 }
 0x680   : > { %v1733_v4 = vpop.xlane.xlu1 %1732 }
 0x681   : > { %v1737_v5 = vmul.f32 %v1733_v4, %v2705_v55 }
 0x683   : > { %v1739_v6 = vadd.f32 1e-05, %v1737_v5 }
 0x685   : > { %2373 = vrsqrt.f32 %v1739_v6  ;;  %vm1747_vm12 = vweird.f32 %v1739_v6 }
 0x688   : > { %v1736_v7 = vpop.xlane.xlu2 %1735 }
 0x689   : > { %v1738_v9 = vmul.f32 %v1736_v7, %v2705_v55 }
 0x68b   : > { %v2374_v10 = vpop.eup %2373  ;;  %v1740_v12 = vadd.f32 1e-05, %v1738_v9 }
 0x68c   : > { %v1742_v13 = vmul.f32 %v2374_v10, %v1739_v6  ;;  %vm1748_vm11 = vweird.f32 %v2374_v10 }
 0x68d   : > { %2375 = vrsqrt.f32 %v1740_v12  ;;  %vm1749_vm13 = vmor %vm1747_vm12, %vm1748_vm11  ;;  %vm1757_vm15 = vweird.f32 %v1740_v12 }
 0x68e   : > { %v1743_v14 = vmul.f32 %v2374_v10, %v1742_v13 }
 0x690   : > { %v1744_v15 = vmul.f32 0.5, %v1743_v14 }
 0x692   : > { %v1745_v16 = vsub.f32 1.5, %v1744_v15 }
 0x693   : > { %v2376_v17 = vpop.eup %2375 }
 0x694   : > { %v1746_v18 = vmul.f32 %v2374_v10, %v1745_v16  ;;  %v1752_v19 = vmul.f32 %v2376_v17, %v1740_v12  ;;  %vm1758_vm14 = vweird.f32 %v2376_v17 }
 0x695   : > { %vm1759_vm0 = vmor %vm1757_vm15, %vm1758_vm14 }
 0x696   : > { %v1750_v21 = vsel %vm1749_vm13, %v2374_v10, %v1746_v18  ;;  %v1753_v22 = vmul.f32 %v2376_v17, %v1752_v19 }
 0x697   : > { %v1761_v24 = vmul.f32 %v1750_v21, %v1727_v60 }
 0x698   : > { %v1754_v55 = vmul.f32 0.5, %v1753_v22 }
 0x699   : > { %v1766_v25 = vmul.f32 %v2333_v20, %v1761_v24 }
 0x69a   : > { %v1755_v26 = vsub.f32 1.5, %v1754_v55 }
 0x69b   : > { %v1771_v27 = vadd.f32 %v2334_v23, %v1766_v25 }
 0x69c   : > { %v1756_v28 = vmul.f32 %v2376_v17, %v1755_v26 }
 0x69d   : > { %1773 = vst.msk [vmem:[#allocation2] sm:$0xff] %vm576_vm1, %v1771_v27 }
 0x69e   : > { %v1760_v29 = vsel %vm1759_vm0, %v2376_v17, %v1756_v28 }
 0x69f   : > { %v1762_v30 = vmul.f32 %v1760_v29, %v1728_v1 }
 0x6a1   : > { %v1767_v31 = vmul.f32 %v2333_v20, %v1762_v30  ;;  %1778 = sbr.rel (%p2239_p6) target bundleno = 1854 (0x73e), region = 68 }
 0x6a3   : > { %v1772_v32 = vadd.f32 %v2334_v23, %v1767_v31 }
 0x6a5   : > { %1774 = vst.msk [vmem:[#allocation2 + $0x8] sm:$0xff] %vm576_vm1, %v1772_v32 }
 0x6a6   : > { %v1781_v33 = vlaneseq  ;;  %v1779_v35 = vld [vmem:[%s2765_s1] sm:$0x3]  ;;  %vm1812_vm2 = vcmask 1041409   ;;  %vm1815_vm3 = vcmask 254976  }
 0x6a7   : > { %v1780_v36 = vperm.slane %v1779_v35, 0  ;;  %v1787_v37 = vperm.slane %v1779_v35, 1 }
 0x6a8   : > { %v1782_v34 = vshrl.u32 %v1781_v33, 7 }
 0x6aa   : > { %2377 = vset.pattern.permute.xlu0 %v1782_v34 }
 0x6b2   : > { %1785 = vperm.xlu0 %2377, %v1780_v36  }
 0x6ba   : > { %1792 = vperm.xlu0 %2377, %v1787_v37  }
 0x724   : > { %v1786_v38 = vpop.permute.xlu0 %1785 }
 0x725   : > { %v1794_v39 = vmul.f32 %v1786_v38, %v1771_v27 }
 0x727   : > { %v1796_v40 = vsel %vm576_vm1, %v1794_v39, 0.0 }
 0x728   : > { %v1797_v41 = vrot.slane %v1796_v40, 4 }
 0x72a   : > { %v1798_v42 = vadd.f32 %v1797_v41, %v1796_v40 }
 0x72c   : > { %v1793_v43 = vpop.permute.xlu0 %1792  ;;  %v1799_v45 = vrot.slane %v1798_v42, 2 }
 0x72d   : > { %v1795_v44 = vmul.f32 %v1793_v43, %v1772_v32 }
 0x72e   : > { %v1800_v48 = vadd.f32 %v1799_v45, %v1798_v42 }
 0x72f   : > { %v1803_v46 = vsel %vm576_vm1, %v1795_v44, 0.0 }
 0x730   : > { %v1804_v47 = vrot.slane %v1803_v46, 4  ;;  %v1801_v51 = vrot.slane %v1800_v48, 1 }
 0x732   : > { %v1805_v49 = vadd.f32 %v1804_v47, %v1803_v46  ;;  %v1802_v54 = vadd.f32 %v1801_v51, %v1800_v48 }
 0x734   : > { %v1806_v50 = vrot.slane %v1805_v49, 2 }
 0x736   : > { %v1807_v52 = vadd.f32 %v1806_v50, %v1805_v49 }
 0x738   : > { %v1808_v53 = vrot.slane %v1807_v52, 1 }
 0x73a   : > { %v1809_v8 = vadd.f32 %v1808_v53, %v1807_v52 }
 0x73c   : > { %v1813_v56 = vsel %vm1812_vm2, %v1809_v8, %v1802_v54 }
 0x73d   : > { %1816 = vst.msk [vmem:[#allocation3] sm:$0x3] %vm1815_vm3, %v1813_v56 }
 0x73e PF: > { %s2781_s13 = sadd.s32 4294967295, %s2432_s15   ;;  %s2782_s16 = sld [smem:[#allocation9_spill]] }
 0x73f   : > { %p2288_p7 = scmp.eq.s32.totalorder %s2781_s13, 1  ;;  %s2435_s11 = smov [#allocation3]  }
 0x740   : > { %s1825_s12 = sshll.u32 %s2435_s11, 4  ;;  %s1826_s12 = int_to_ptr.vmem [resolvable:$true] %s1825_s12 }
 0x744   : > { %s1827_s27 = sshll.u32 %s2782_s16, 4  ;;  %s1828_s27 = int_to_ptr.hbm [resolvable:$true] %s1827_s27 }
 0x745   : > { %2285 = dma.vmem_to_hbm [thread:$0]  (%p2288_p7), %s1826_s12, 32, %s1828_s27, [#allocation4]  }
 0x746   : > { %2419 = dma.done.wait (%p2288_p7), [#allocation4], 32  }
 0x747   : > { %2421 = vsyncadd (%p2288_p7), [#allocation4], 4294967264 }
 0x748 PF: > { %s21_s15 = sadd.s32 1, %s2432_s15   ;;  %s2783_s13 = sld [smem:[#allocation6_spill]] }
 0x749   : > { %p18_p8 = scmp.ge.s32.totalorder %s21_s15, 4   ;;  %s2784_s14 = sld [smem:[#allocation7_spill]] }
 0x74b   :  { %20 = sbr.rel (!%p18_p8) target bundleno = 5 (0x5), region = 153 }
 0x750   :  { %1841 = vsyncpa [#allocation4], 1 }
 0x751   :  { %1843 = vsyncpa [#allocation4 + $0x1], 1 }

</bundles_post_ra>
